<compile_context>
chip_gen: v5e
topology: v5e:2x2
jax: 0.10.0
libtpu: 0.0.40
codegen_flags: <defaults>
</compile_context>

<pallas_src>
import functools

import jax
import jax.numpy as jnp
from jax import lax
from jax.experimental import pallas as pl
from jax.experimental.pallas import tpu as pltpu

NEG_SLOPE = 0.02
LN_EPS = 1e-5


def _leaky_relu(x):
    return jnp.where(x >= 0.0, x, NEG_SLOPE * x)


def _layer_norm(x, gamma, beta):
    mu = jnp.mean(x, axis=-1, keepdims=True)
    var = jnp.mean((x - mu) ** 2, axis=-1, keepdims=True)
    return (x - mu) * lax.rsqrt(var + LN_EPS) * gamma + beta


def baseball_rnn_kernel(
    # inputs
    x_ref,          # (T, BT, D)  time-major batch tile
    h0_ref,         # (BT, H)
    fc_in_wT_ref,   # (D, H)
    w_ih_ref,       # (H, GW)  [W_ir | W_iz | W_in]^T, gate blocks at stride G
    w_hh_ref,       # (H, GW)  [W_hr | W_hz | W_hn]^T
    gx_bias_ref,    # (1, GW)  [b_ir+b_hr | b_iz+b_hz | b_in]
    slab_ref,       # (8, H) rows: fc_in_b, ln1_g, ln1_b, ln2_g, ln2_b, b_hn, fc_out_w, fc_out_b
    # outputs
    out_ref,        # (BT, 1)
    # scratch
    gx_ref,         # (T, BT, GW) precomputed input-side gate pre-activations (f32)
    *,
    gate_stride,    # static lane offset between the r / z / n gate blocks
):
    T, BT, D = x_ref.shape
    H = h0_ref.shape[-1]
    G = gate_stride

    # ---- small vector params: one (8, H) tile, hoisted (cheap, stays in a few vregs) ----
    fc_in_b = slab_ref[0:1, :]
    ln1_g = slab_ref[1:2, :]
    ln1_b = slab_ref[2:3, :]
    ln2_g = slab_ref[3:4, :]
    ln2_b = slab_ref[4:5, :]
    b_hn = slab_ref[5:6, :]
    w_out = slab_ref[6:7, :]
    b_out = slab_ref[7:8, 0:1]

    mxu_dtype = w_ih_ref.dtype
    gx_bias = gx_bias_ref[...]

    # ---- non-recurrent part: fc_in -> LayerNorm -> LeakyReLU -> input-side gates.
    # Written tile-aligned into the (T, BT, GW) scratch; read back with gx_ref[t].
    for t in range(T):
        a = jnp.dot(x_ref[t], fc_in_wT_ref[...],
                    preferred_element_type=jnp.float32) + fc_in_b
        a = _leaky_relu(_layer_norm(a, ln1_g, ln1_b))
        # dropout: inference -> identity
        gx_ref[t] = jnp.dot(a.astype(mxu_dtype), w_ih_ref[...],
                            preferred_element_type=jnp.float32) + gx_bias

    # ---- GRU recurrence (PyTorch gate order r, z, n); one MXU push per step.
    # w_hh is streamed from VMEM at the dot site (not pinned in vregs across the loop).
    def step(t, h):
        gh = jnp.dot(h.astype(mxu_dtype), w_hh_ref[...],
                     preferred_element_type=jnp.float32)          # (BT, GW)
        gx = gx_ref[t]                                            # (BT, GW) tile-aligned
        r = jax.nn.sigmoid(gx[:, 0:H] + gh[:, 0:H])
        z = jax.nn.sigmoid(gx[:, G:G + H] + gh[:, G:G + H])
        n = jnp.tanh(gx[:, 2 * G:2 * G + H] + r * (gh[:, 2 * G:2 * G + H] + b_hn))
        return (1.0 - z) * n + z * h

    h_last = lax.fori_loop(0, T, step, h0_ref[...].astype(jnp.float32),
                           unroll=True)                           # == out[:, -1, :]

    # ---- LayerNorm -> fc_out (VPU multiply + lane reduce, no N=1 matmul) -> LeakyReLU ----
    h_ln = _layer_norm(h_last, ln2_g, ln2_b)
    o = jnp.sum(h_ln * w_out, axis=-1, keepdims=True) + b_out
    out_ref[...] = _leaky_relu(o).astype(out_ref.dtype)


def init_params(key, input_size, hidden_size):
    """Deterministic synthetic parameters (shapes follow the nn.Module __init__)."""
    H, D = hidden_size, input_size
    ks = jax.random.split(key, 16)
    s = 0.1
    return {
        "fc_in_w": s * jax.random.normal(ks[0], (H, D), jnp.float32),    # nn.Linear(D, H)
        "fc_in_b": s * jax.random.normal(ks[1], (H,), jnp.float32),
        "ln1_g": jnp.ones((H,), jnp.float32),
        "ln1_b": jnp.zeros((H,), jnp.float32),
        # GRU weight_ih_l0 (3H, H) split into r/z/n blocks; same for weight_hh_l0.
        "w_ir": s * jax.random.normal(ks[2], (H, H), jnp.float32),
        "w_iz": s * jax.random.normal(ks[3], (H, H), jnp.float32),
        "w_in": s * jax.random.normal(ks[4], (H, H), jnp.float32),
        "w_hr": s * jax.random.normal(ks[5], (H, H), jnp.float32),
        "w_hz": s * jax.random.normal(ks[6], (H, H), jnp.float32),
        "w_hn": s * jax.random.normal(ks[7], (H, H), jnp.float32),
        "b_ir": s * jax.random.normal(ks[8], (H,), jnp.float32),
        "b_iz": s * jax.random.normal(ks[9], (H,), jnp.float32),
        "b_in": s * jax.random.normal(ks[10], (H,), jnp.float32),
        "b_hr": s * jax.random.normal(ks[11], (H,), jnp.float32),
        "b_hz": s * jax.random.normal(ks[12], (H,), jnp.float32),
        "b_hn": s * jax.random.normal(ks[13], (H,), jnp.float32),
        "ln2_g": jnp.ones((H,), jnp.float32),
        "ln2_b": jnp.zeros((H,), jnp.float32),
        "fc_out_w": s * jax.random.normal(ks[14], (1, H), jnp.float32),  # nn.Linear(H, 1)
        "fc_out_b": jnp.zeros((1,), jnp.float32),
    }


def baseball_rnn_forward(x, h0, params, *, use_bf16=False):
    """x: (B, T, D_in) f32; h0: (B, H) f32 (n_layers=1). Returns out.squeeze()."""
    B, T, D = x.shape
    H = h0.shape[-1]

    # Gate packing: one 128-lane block for all three gates when 3H <= 128,
    # otherwise each gate padded to a 128-lane multiple.
    if 3 * H <= 128:
        G = H
        GW = 128
    else:
        G = ((H + 127) // 128) * 128
        GW = 3 * G

    def gate_cat(wr, wz, wn):   # (H,H) torch-layout blocks -> (H, GW), transposed (y = x @ W^T)
        if G == H:
            w = jnp.concatenate([wr.T, wz.T, wn.T], axis=1)        # (H, 3H)
            return jnp.pad(w, ((0, 0), (0, GW - 3 * H)))
        blocks = [jnp.pad(w.T, ((0, 0), (0, G - H))) for w in (wr, wz, wn)]
        return jnp.concatenate(blocks, axis=1)

    def bias_cat(br, bz, bn):
        if G == H:
            b = jnp.concatenate([br, bz, bn]).reshape(1, -1)
            return jnp.pad(b, ((0, 0), (0, GW - 3 * H)))
        blocks = [jnp.pad(b.reshape(1, -1), ((0, 0), (0, G - H))) for b in (br, bz, bn)]
        return jnp.concatenate(blocks, axis=1)

    w_ih_cat = gate_cat(params["w_ir"], params["w_iz"], params["w_in"])
    w_hh_cat = gate_cat(params["w_hr"], params["w_hz"], params["w_hn"])
    # Fold constant gate biases into the precomputed input-side gates (b_hn stays inside).
    gx_bias = bias_cat(params["b_ir"] + params["b_hr"],
                       params["b_iz"] + params["b_hz"],
                       params["b_in"]).astype(jnp.float32)

    # One (8, H) slab for all remaining small vector params.
    slab = jnp.stack(
        [params["fc_in_b"], params["ln1_g"], params["ln1_b"],
         params["ln2_g"], params["ln2_b"], params["b_hn"],
         params["fc_out_w"].reshape(-1),
         jnp.full((H,), params["fc_out_b"][0], jnp.float32)], axis=0)     # (8, H)

    fc_in_wT = params["fc_in_w"].T                                        # (D, H)

    # Layout plumbing outside the kernel (free XLA transpose): batch-first -> time-major.
    x_tm = jnp.transpose(x, (1, 0, 2))                                    # (T, B, D)

    mxu_dtype = jnp.bfloat16 if use_bf16 else jnp.float32
    x_tm = x_tm.astype(mxu_dtype)
    fc_in_wT = fc_in_wT.astype(mxu_dtype)
    w_ih_cat = w_ih_cat.astype(mxu_dtype)
    w_hh_cat = w_hh_cat.astype(mxu_dtype)

    # Batch tiling: parallel grid over batch (both v7x TCs; bounds per-tile VMEM).
    if B <= 8:
        BT = B
    else:
        BT = 8 * min(max(B // 8, 1), 32)   # up to 256 rows per tile
    n_bt = pl.cdiv(B, BT)

    # Explicit scoped-VMEM budget: tiles + weights + double buffers + headroom.
    esize = jnp.dtype(mxu_dtype).itemsize
    weight_bytes = (fc_in_wT.size + w_ih_cat.size + w_hh_cat.size) * esize \
        + (gx_bias.size + slab.size) * 4
    tile_bytes = (T * BT * D + BT * H) * esize + T * BT * GW * 4 + BT * 4
    vmem_limit = int(min(max(2 * (weight_bytes + tile_bytes) + (4 << 20), 16 << 20),
                         64 << 20))

    kernel = functools.partial(baseball_rnn_kernel, gate_stride=G)

    out = pl.pallas_call(
        kernel,
        out_shape=jax.ShapeDtypeStruct((B, 1), jnp.float32),
        grid_spec=pltpu.PrefetchScalarGridSpec(
            num_scalar_prefetch=0,
            grid=(n_bt,),
            in_specs=[
                pl.BlockSpec((T, BT, D), lambda b: (0, b, 0)),   # x (time-major)
                pl.BlockSpec((BT, H), lambda b: (b, 0)),         # h0
                pl.BlockSpec((D, H), lambda b: (0, 0)),          # fc_in W^T
                pl.BlockSpec((H, GW), lambda b: (0, 0)),         # fused W_ih^T
                pl.BlockSpec((H, GW), lambda b: (0, 0)),         # fused W_hh^T
                pl.BlockSpec((1, GW), lambda b: (0, 0)),         # folded gate bias
                pl.BlockSpec((8, H), lambda b: (0, 0)),          # small-param slab
            ],
            out_specs=pl.BlockSpec((BT, 1), lambda b: (b, 0)),
            scratch_shapes=[pltpu.VMEM((T, BT, GW), jnp.float32)],
        ),
        compiler_params=pltpu.CompilerParams(
            dimension_semantics=("parallel",),
            vmem_limit_bytes=vmem_limit,
        ),
    )(x_tm, h0.astype(jnp.float32), fc_in_wT, w_ih_cat, w_hh_cat, gx_bias, slab)
    return jnp.squeeze(out)  # matches torch out.squeeze()


def baseball_rnn_reference(x, h0, params):
    """Pure-JAX reference of the eval-mode forward (for a gross-error sanity check)."""
    B, T, D = x.shape
    a = jnp.einsum("btd,hd->bth", x, params["fc_in_w"]) + params["fc_in_b"]
    mu = a.mean(-1, keepdims=True)
    var = ((a - mu) ** 2).mean(-1, keepdims=True)
    a = (a - mu) * lax.rsqrt(var + LN_EPS) * params["ln1_g"] + params["ln1_b"]
    a = jnp.where(a >= 0, a, NEG_SLOPE * a)
    h = h0
    for t in range(T):
        xt = a[:, t, :]
        r = jax.nn.sigmoid(xt @ params["w_ir"].T + params["b_ir"]
                           + h @ params["w_hr"].T + params["b_hr"])
        z = jax.nn.sigmoid(xt @ params["w_iz"].T + params["b_iz"]
                           + h @ params["w_hz"].T + params["b_hz"])
        n = jnp.tanh(xt @ params["w_in"].T + params["b_in"]
                     + r * (h @ params["w_hn"].T + params["b_hn"]))
        h = (1.0 - z) * n + z * h
    mu = h.mean(-1, keepdims=True)
    var = ((h - mu) ** 2).mean(-1, keepdims=True)
    hn = (h - mu) * lax.rsqrt(var + LN_EPS) * params["ln2_g"] + params["ln2_b"]
    o = hn @ params["fc_out_w"].T + params["fc_out_b"]
    o = jnp.where(o >= 0, o, NEG_SLOPE * o)
    return jnp.squeeze(o)


if __name__ == "__main__":
    B, T, D_IN, H = 2, 8, 16, 32

    key = jax.random.PRNGKey(0)
    k_x, k_h0, k_p = jax.random.split(key, 3)

    x = jax.random.normal(k_x, (B, T, D_IN), jnp.float32)
    # hidden_init='rand' -> torch.randn(n_layers, B, H); n_layers=1 -> (B, H)
    h0 = jax.random.normal(k_h0, (B, H), jnp.float32)
    params = init_params(k_p, D_IN, H)

    y = baseball_rnn_forward(x, h0, params)
    y = jax.block_until_ready(y)
    assert y.shape == (B,) and y.dtype == jnp.float32

    y_ref = jax.block_until_ready(baseball_rnn_reference(x, h0, params))
    assert jnp.max(jnp.abs(y - y_ref)) < 5e-2  # gross-error guard only

    print("KERNEL_OK")
</pallas_src>

<mosaic_0001>
module attributes {stable_mosaic.version = 11 : i64} {
  func.func @baseball_rnn_kernel(%arg0: i32, %arg1: memref<8x2x16xf32, #tpu.memory_space<vmem>>, %arg2: memref<2x32xf32, #tpu.memory_space<vmem>>, %arg3: memref<16x32xf32, #tpu.memory_space<vmem>>, %arg4: memref<32x128xf32, #tpu.memory_space<vmem>>, %arg5: memref<32x128xf32, #tpu.memory_space<vmem>>, %arg6: memref<1x128xf32, #tpu.memory_space<vmem>>, %arg7: memref<8x32xf32, #tpu.memory_space<vmem>>, %arg8: memref<2x1xf32, #tpu.memory_space<vmem>>, %arg9: memref<8x2x128xf32, #tpu.memory_space<vmem>>) attributes {dimension_semantics = [#tpu.dimension_semantics<parallel>], iteration_bounds = array<i64: 1>, scalar_prefetch = 0 : i64, scratch_operands = 1 : i64, tpu.core_type = #tpu.core_type<tc>, window_params = [{transform_indices = @transform_0, window_bounds = array<i64: 8, 2, 16>}, {transform_indices = @transform_1, window_bounds = array<i64: 2, 32>}, {pipeline_mode = #tpu.pipeline_mode<synchronous>, transform_indices = @transform_2, window_bounds = array<i64: 16, 32>}, {pipeline_mode = #tpu.pipeline_mode<synchronous>, transform_indices = @transform_3, window_bounds = array<i64: 32, 128>}, {pipeline_mode = #tpu.pipeline_mode<synchronous>, transform_indices = @transform_4, window_bounds = array<i64: 32, 128>}, {pipeline_mode = #tpu.pipeline_mode<synchronous>, transform_indices = @transform_5, window_bounds = array<i64: 1, 128>}, {pipeline_mode = #tpu.pipeline_mode<synchronous>, transform_indices = @transform_6, window_bounds = array<i64: 8, 32>}, {transform_indices = @transform_7, window_bounds = array<i64: 2, 1>}]} {
    %c0 = arith.constant 0 : index
    %c0_0 = arith.constant 0 : index
    %0 = vector.load %arg7[%c0, %c0_0] : memref<8x32xf32, #tpu.memory_space<vmem>>, vector<1x32xf32>
    %c1 = arith.constant 1 : index
    %c0_1 = arith.constant 0 : index
    %1 = vector.load %arg7[%c1, %c0_1] : memref<8x32xf32, #tpu.memory_space<vmem>>, vector<1x32xf32>
    %c2 = arith.constant 2 : index
    %c0_2 = arith.constant 0 : index
    %2 = vector.load %arg7[%c2, %c0_2] : memref<8x32xf32, #tpu.memory_space<vmem>>, vector<1x32xf32>
    %c3 = arith.constant 3 : index
    %c0_3 = arith.constant 0 : index
    %3 = vector.load %arg7[%c3, %c0_3] : memref<8x32xf32, #tpu.memory_space<vmem>>, vector<1x32xf32>
    %c4 = arith.constant 4 : index
    %c0_4 = arith.constant 0 : index
    %4 = vector.load %arg7[%c4, %c0_4] : memref<8x32xf32, #tpu.memory_space<vmem>>, vector<1x32xf32>
    %c5 = arith.constant 5 : index
    %c0_5 = arith.constant 0 : index
    %5 = vector.load %arg7[%c5, %c0_5] : memref<8x32xf32, #tpu.memory_space<vmem>>, vector<1x32xf32>
    %c6 = arith.constant 6 : index
    %c0_6 = arith.constant 0 : index
    %6 = vector.load %arg7[%c6, %c0_6] : memref<8x32xf32, #tpu.memory_space<vmem>>, vector<1x32xf32>
    %c7 = arith.constant 7 : index
    %c0_7 = arith.constant 0 : index
    %7 = vector.load %arg7[%c7, %c0_7] : memref<8x32xf32, #tpu.memory_space<vmem>>, vector<1x1xf32>
    %c0_8 = arith.constant 0 : index
    %c0_9 = arith.constant 0 : index
    %8 = vector.load %arg6[%c0_8, %c0_9] : memref<1x128xf32, #tpu.memory_space<vmem>>, vector<1x128xf32>
    %c0_10 = arith.constant 0 : index
    %c0_11 = arith.constant 0 : index
    %c0_12 = arith.constant 0 : index
    %9 = vector.load %arg1[%c0_10, %c0_11, %c0_12] : memref<8x2x16xf32, #tpu.memory_space<vmem>>, vector<1x2x16xf32>
    %10 = vector.shape_cast %9 : vector<1x2x16xf32> to vector<2x16xf32>
    %c0_13 = arith.constant 0 : index
    %c0_14 = arith.constant 0 : index
    %11 = vector.load %arg3[%c0_13, %c0_14] : memref<16x32xf32, #tpu.memory_space<vmem>>, vector<16x32xf32>
    %cst = arith.constant dense<0.000000e+00> : vector<2x32xf32>
    %12 = tpu.matmul %10, %11, %cst {dimension_numbers = #tpu.dot_dimension_numbers<[1], [0], [0], [1], [0, 0, 1, 1], [], []>} : vector<2x16xf32>, vector<16x32xf32>, vector<2x32xf32> -> vector<2x32xf32>
    %13 = vector.broadcast %0 : vector<1x32xf32> to vector<2x32xf32>
    %14 = arith.addf %12, %13 : vector<2x32xf32>
    %cst_15 = arith.constant dense<0.000000e+00> : vector<2xf32>
    %15 = vector.multi_reduction <add>, %14, %cst_15 [1] : vector<2x32xf32> to vector<2xf32>
    %16 = vector.shape_cast %15 : vector<2xf32> to vector<2x1xf32>
    %cst_16 = arith.constant 3.200000e+01 : f32
    %17 = vector.broadcast %cst_16 : f32 to vector<2x1xf32>
    %18 = arith.divf %16, %17 : vector<2x1xf32>
    %19 = vector.broadcast %18 : vector<2x1xf32> to vector<2x32xf32>
    %20 = arith.subf %14, %19 : vector<2x32xf32>
    %21 = arith.mulf %20, %20 : vector<2x32xf32>
    %cst_17 = arith.constant dense<0.000000e+00> : vector<2xf32>
    %22 = vector.multi_reduction <add>, %21, %cst_17 [1] : vector<2x32xf32> to vector<2xf32>
    %23 = vector.shape_cast %22 : vector<2xf32> to vector<2x1xf32>
    %cst_18 = arith.constant 3.200000e+01 : f32
    %24 = vector.broadcast %cst_18 : f32 to vector<2x1xf32>
    %25 = arith.divf %23, %24 : vector<2x1xf32>
    %26 = vector.broadcast %18 : vector<2x1xf32> to vector<2x32xf32>
    %27 = arith.subf %14, %26 : vector<2x32xf32>
    %cst_19 = arith.constant 9.99999974E-6 : f32
    %28 = vector.broadcast %cst_19 : f32 to vector<2x1xf32>
    %29 = arith.addf %25, %28 : vector<2x1xf32>
    %30 = math.rsqrt %29 : vector<2x1xf32>
    %31 = vector.broadcast %30 : vector<2x1xf32> to vector<2x32xf32>
    %32 = arith.mulf %27, %31 : vector<2x32xf32>
    %33 = vector.broadcast %1 : vector<1x32xf32> to vector<2x32xf32>
    %34 = arith.mulf %32, %33 : vector<2x32xf32>
    %35 = vector.broadcast %2 : vector<1x32xf32> to vector<2x32xf32>
    %36 = arith.addf %34, %35 : vector<2x32xf32>
    %cst_20 = arith.constant 0.000000e+00 : f32
    %37 = vector.broadcast %cst_20 : f32 to vector<2x32xf32>
    %38 = arith.cmpf oge, %36, %37 : vector<2x32xf32>
    %cst_21 = arith.constant 2.000000e-02 : f32
    %39 = vector.broadcast %cst_21 : f32 to vector<2x32xf32>
    %40 = arith.mulf %39, %36 : vector<2x32xf32>
    %41 = arith.select %38, %36, %40 : vector<2x32xi1>, vector<2x32xf32>
    %c0_22 = arith.constant 0 : index
    %c0_23 = arith.constant 0 : index
    %42 = vector.load %arg4[%c0_22, %c0_23] : memref<32x128xf32, #tpu.memory_space<vmem>>, vector<32x128xf32>
    %cst_24 = arith.constant dense<0.000000e+00> : vector<2x128xf32>
    %43 = tpu.matmul %41, %42, %cst_24 {dimension_numbers = #tpu.dot_dimension_numbers<[1], [0], [0], [1], [0, 0, 1, 1], [], []>} : vector<2x32xf32>, vector<32x128xf32>, vector<2x128xf32> -> vector<2x128xf32>
    %44 = vector.broadcast %8 : vector<1x128xf32> to vector<2x128xf32>
    %45 = arith.addf %43, %44 : vector<2x128xf32>
    %c0_25 = arith.constant 0 : index
    %c0_26 = arith.constant 0 : index
    %c0_27 = arith.constant 0 : index
    %46 = vector.load %arg9[%c0_25, %c0_26, %c0_27] : memref<8x2x128xf32, #tpu.memory_space<vmem>>, vector<1x2x128xf32>
    %47 = vector.shape_cast %46 : vector<1x2x128xf32> to vector<2x128xf32>
    %48 = vector.shape_cast %45 : vector<2x128xf32> to vector<1x2x128xf32>
    tpu.vector_store %arg9[%c0_25, %c0_26, %c0_27], %48 {strides = array<i32>} : memref<8x2x128xf32, #tpu.memory_space<vmem>>, vector<1x2x128xf32>,
    %c1_28 = arith.constant 1 : index
    %c0_29 = arith.constant 0 : index
    %c0_30 = arith.constant 0 : index
    %49 = vector.load %arg1[%c1_28, %c0_29, %c0_30] : memref<8x2x16xf32, #tpu.memory_space<vmem>>, vector<1x2x16xf32>
    %50 = vector.shape_cast %49 : vector<1x2x16xf32> to vector<2x16xf32>
    %c0_31 = arith.constant 0 : index
    %c0_32 = arith.constant 0 : index
    %51 = vector.load %arg3[%c0_31, %c0_32] : memref<16x32xf32, #tpu.memory_space<vmem>>, vector<16x32xf32>
    %cst_33 = arith.constant dense<0.000000e+00> : vector<2x32xf32>
    %52 = tpu.matmul %50, %51, %cst_33 {dimension_numbers = #tpu.dot_dimension_numbers<[1], [0], [0], [1], [0, 0, 1, 1], [], []>} : vector<2x16xf32>, vector<16x32xf32>, vector<2x32xf32> -> vector<2x32xf32>
    %53 = vector.broadcast %0 : vector<1x32xf32> to vector<2x32xf32>
    %54 = arith.addf %52, %53 : vector<2x32xf32>
    %cst_34 = arith.constant dense<0.000000e+00> : vector<2xf32>
    %55 = vector.multi_reduction <add>, %54, %cst_34 [1] : vector<2x32xf32> to vector<2xf32>
    %56 = vector.shape_cast %55 : vector<2xf32> to vector<2x1xf32>
    %cst_35 = arith.constant 3.200000e+01 : f32
    %57 = vector.broadcast %cst_35 : f32 to vector<2x1xf32>
    %58 = arith.divf %56, %57 : vector<2x1xf32>
    %59 = vector.broadcast %58 : vector<2x1xf32> to vector<2x32xf32>
    %60 = arith.subf %54, %59 : vector<2x32xf32>
    %61 = arith.mulf %60, %60 : vector<2x32xf32>
    %cst_36 = arith.constant dense<0.000000e+00> : vector<2xf32>
    %62 = vector.multi_reduction <add>, %61, %cst_36 [1] : vector<2x32xf32> to vector<2xf32>
    %63 = vector.shape_cast %62 : vector<2xf32> to vector<2x1xf32>
    %cst_37 = arith.constant 3.200000e+01 : f32
    %64 = vector.broadcast %cst_37 : f32 to vector<2x1xf32>
    %65 = arith.divf %63, %64 : vector<2x1xf32>
    %66 = vector.broadcast %58 : vector<2x1xf32> to vector<2x32xf32>
    %67 = arith.subf %54, %66 : vector<2x32xf32>
    %cst_38 = arith.constant 9.99999974E-6 : f32
    %68 = vector.broadcast %cst_38 : f32 to vector<2x1xf32>
    %69 = arith.addf %65, %68 : vector<2x1xf32>
    %70 = math.rsqrt %69 : vector<2x1xf32>
    %71 = vector.broadcast %70 : vector<2x1xf32> to vector<2x32xf32>
    %72 = arith.mulf %67, %71 : vector<2x32xf32>
    %73 = vector.broadcast %1 : vector<1x32xf32> to vector<2x32xf32>
    %74 = arith.mulf %72, %73 : vector<2x32xf32>
    %75 = vector.broadcast %2 : vector<1x32xf32> to vector<2x32xf32>
    %76 = arith.addf %74, %75 : vector<2x32xf32>
    %cst_39 = arith.constant 0.000000e+00 : f32
    %77 = vector.broadcast %cst_39 : f32 to vector<2x32xf32>
    %78 = arith.cmpf oge, %76, %77 : vector<2x32xf32>
    %cst_40 = arith.constant 2.000000e-02 : f32
    %79 = vector.broadcast %cst_40 : f32 to vector<2x32xf32>
    %80 = arith.mulf %79, %76 : vector<2x32xf32>
    %81 = arith.select %78, %76, %80 : vector<2x32xi1>, vector<2x32xf32>
    %c0_41 = arith.constant 0 : index
    %c0_42 = arith.constant 0 : index
    %82 = vector.load %arg4[%c0_41, %c0_42] : memref<32x128xf32, #tpu.memory_space<vmem>>, vector<32x128xf32>
    %cst_43 = arith.constant dense<0.000000e+00> : vector<2x128xf32>
    %83 = tpu.matmul %81, %82, %cst_43 {dimension_numbers = #tpu.dot_dimension_numbers<[1], [0], [0], [1], [0, 0, 1, 1], [], []>} : vector<2x32xf32>, vector<32x128xf32>, vector<2x128xf32> -> vector<2x128xf32>
    %84 = vector.broadcast %8 : vector<1x128xf32> to vector<2x128xf32>
    %85 = arith.addf %83, %84 : vector<2x128xf32>
    %c1_44 = arith.constant 1 : index
    %c0_45 = arith.constant 0 : index
    %c0_46 = arith.constant 0 : index
    %86 = vector.load %arg9[%c1_44, %c0_45, %c0_46] : memref<8x2x128xf32, #tpu.memory_space<vmem>>, vector<1x2x128xf32>
    %87 = vector.shape_cast %86 : vector<1x2x128xf32> to vector<2x128xf32>
    %88 = vector.shape_cast %85 : vector<2x128xf32> to vector<1x2x128xf32>
    tpu.vector_store %arg9[%c1_44, %c0_45, %c0_46], %88 {strides = array<i32>} : memref<8x2x128xf32, #tpu.memory_space<vmem>>, vector<1x2x128xf32>,
    %c2_47 = arith.constant 2 : index
    %c0_48 = arith.constant 0 : index
    %c0_49 = arith.constant 0 : index
    %89 = vector.load %arg1[%c2_47, %c0_48, %c0_49] : memref<8x2x16xf32, #tpu.memory_space<vmem>>, vector<1x2x16xf32>
    %90 = vector.shape_cast %89 : vector<1x2x16xf32> to vector<2x16xf32>
    %c0_50 = arith.constant 0 : index
    %c0_51 = arith.constant 0 : index
    %91 = vector.load %arg3[%c0_50, %c0_51] : memref<16x32xf32, #tpu.memory_space<vmem>>, vector<16x32xf32>
    %cst_52 = arith.constant dense<0.000000e+00> : vector<2x32xf32>
    %92 = tpu.matmul %90, %91, %cst_52 {dimension_numbers = #tpu.dot_dimension_numbers<[1], [0], [0], [1], [0, 0, 1, 1], [], []>} : vector<2x16xf32>, vector<16x32xf32>, vector<2x32xf32> -> vector<2x32xf32>
    %93 = vector.broadcast %0 : vector<1x32xf32> to vector<2x32xf32>
    %94 = arith.addf %92, %93 : vector<2x32xf32>
    %cst_53 = arith.constant dense<0.000000e+00> : vector<2xf32>
    %95 = vector.multi_reduction <add>, %94, %cst_53 [1] : vector<2x32xf32> to vector<2xf32>
    %96 = vector.shape_cast %95 : vector<2xf32> to vector<2x1xf32>
    %cst_54 = arith.constant 3.200000e+01 : f32
    %97 = vector.broadcast %cst_54 : f32 to vector<2x1xf32>
    %98 = arith.divf %96, %97 : vector<2x1xf32>
    %99 = vector.broadcast %98 : vector<2x1xf32> to vector<2x32xf32>
    %100 = arith.subf %94, %99 : vector<2x32xf32>
    %101 = arith.mulf %100, %100 : vector<2x32xf32>
    %cst_55 = arith.constant dense<0.000000e+00> : vector<2xf32>
    %102 = vector.multi_reduction <add>, %101, %cst_55 [1] : vector<2x32xf32> to vector<2xf32>
    %103 = vector.shape_cast %102 : vector<2xf32> to vector<2x1xf32>
    %cst_56 = arith.constant 3.200000e+01 : f32
    %104 = vector.broadcast %cst_56 : f32 to vector<2x1xf32>
    %105 = arith.divf %103, %104 : vector<2x1xf32>
    %106 = vector.broadcast %98 : vector<2x1xf32> to vector<2x32xf32>
    %107 = arith.subf %94, %106 : vector<2x32xf32>
    %cst_57 = arith.constant 9.99999974E-6 : f32
    %108 = vector.broadcast %cst_57 : f32 to vector<2x1xf32>
    %109 = arith.addf %105, %108 : vector<2x1xf32>
    %110 = math.rsqrt %109 : vector<2x1xf32>
    %111 = vector.broadcast %110 : vector<2x1xf32> to vector<2x32xf32>
    %112 = arith.mulf %107, %111 : vector<2x32xf32>
    %113 = vector.broadcast %1 : vector<1x32xf32> to vector<2x32xf32>
    %114 = arith.mulf %112, %113 : vector<2x32xf32>
    %115 = vector.broadcast %2 : vector<1x32xf32> to vector<2x32xf32>
    %116 = arith.addf %114, %115 : vector<2x32xf32>
    %cst_58 = arith.constant 0.000000e+00 : f32
    %117 = vector.broadcast %cst_58 : f32 to vector<2x32xf32>
    %118 = arith.cmpf oge, %116, %117 : vector<2x32xf32>
    %cst_59 = arith.constant 2.000000e-02 : f32
    %119 = vector.broadcast %cst_59 : f32 to vector<2x32xf32>
    %120 = arith.mulf %119, %116 : vector<2x32xf32>
    %121 = arith.select %118, %116, %120 : vector<2x32xi1>, vector<2x32xf32>
    %c0_60 = arith.constant 0 : index
    %c0_61 = arith.constant 0 : index
    %122 = vector.load %arg4[%c0_60, %c0_61] : memref<32x128xf32, #tpu.memory_space<vmem>>, vector<32x128xf32>
    %cst_62 = arith.constant dense<0.000000e+00> : vector<2x128xf32>
    %123 = tpu.matmul %121, %122, %cst_62 {dimension_numbers = #tpu.dot_dimension_numbers<[1], [0], [0], [1], [0, 0, 1, 1], [], []>} : vector<2x32xf32>, vector<32x128xf32>, vector<2x128xf32> -> vector<2x128xf32>
    %124 = vector.broadcast %8 : vector<1x128xf32> to vector<2x128xf32>
    %125 = arith.addf %123, %124 : vector<2x128xf32>
    %c2_63 = arith.constant 2 : index
    %c0_64 = arith.constant 0 : index
    %c0_65 = arith.constant 0 : index
    %126 = vector.load %arg9[%c2_63, %c0_64, %c0_65] : memref<8x2x128xf32, #tpu.memory_space<vmem>>, vector<1x2x128xf32>
    %127 = vector.shape_cast %126 : vector<1x2x128xf32> to vector<2x128xf32>
    %128 = vector.shape_cast %125 : vector<2x128xf32> to vector<1x2x128xf32>
    tpu.vector_store %arg9[%c2_63, %c0_64, %c0_65], %128 {strides = array<i32>} : memref<8x2x128xf32, #tpu.memory_space<vmem>>, vector<1x2x128xf32>,
    %c3_66 = arith.constant 3 : index
    %c0_67 = arith.constant 0 : index
    %c0_68 = arith.constant 0 : index
    %129 = vector.load %arg1[%c3_66, %c0_67, %c0_68] : memref<8x2x16xf32, #tpu.memory_space<vmem>>, vector<1x2x16xf32>
    %130 = vector.shape_cast %129 : vector<1x2x16xf32> to vector<2x16xf32>
    %c0_69 = arith.constant 0 : index
    %c0_70 = arith.constant 0 : index
    %131 = vector.load %arg3[%c0_69, %c0_70] : memref<16x32xf32, #tpu.memory_space<vmem>>, vector<16x32xf32>
    %cst_71 = arith.constant dense<0.000000e+00> : vector<2x32xf32>
    %132 = tpu.matmul %130, %131, %cst_71 {dimension_numbers = #tpu.dot_dimension_numbers<[1], [0], [0], [1], [0, 0, 1, 1], [], []>} : vector<2x16xf32>, vector<16x32xf32>, vector<2x32xf32> -> vector<2x32xf32>
    %133 = vector.broadcast %0 : vector<1x32xf32> to vector<2x32xf32>
    %134 = arith.addf %132, %133 : vector<2x32xf32>
    %cst_72 = arith.constant dense<0.000000e+00> : vector<2xf32>
    %135 = vector.multi_reduction <add>, %134, %cst_72 [1] : vector<2x32xf32> to vector<2xf32>
    %136 = vector.shape_cast %135 : vector<2xf32> to vector<2x1xf32>
    %cst_73 = arith.constant 3.200000e+01 : f32
    %137 = vector.broadcast %cst_73 : f32 to vector<2x1xf32>
    %138 = arith.divf %136, %137 : vector<2x1xf32>
    %139 = vector.broadcast %138 : vector<2x1xf32> to vector<2x32xf32>
    %140 = arith.subf %134, %139 : vector<2x32xf32>
    %141 = arith.mulf %140, %140 : vector<2x32xf32>
    %cst_74 = arith.constant dense<0.000000e+00> : vector<2xf32>
    %142 = vector.multi_reduction <add>, %141, %cst_74 [1] : vector<2x32xf32> to vector<2xf32>
    %143 = vector.shape_cast %142 : vector<2xf32> to vector<2x1xf32>
    %cst_75 = arith.constant 3.200000e+01 : f32
    %144 = vector.broadcast %cst_75 : f32 to vector<2x1xf32>
    %145 = arith.divf %143, %144 : vector<2x1xf32>
    %146 = vector.broadcast %138 : vector<2x1xf32> to vector<2x32xf32>
    %147 = arith.subf %134, %146 : vector<2x32xf32>
    %cst_76 = arith.constant 9.99999974E-6 : f32
    %148 = vector.broadcast %cst_76 : f32 to vector<2x1xf32>
    %149 = arith.addf %145, %148 : vector<2x1xf32>
    %150 = math.rsqrt %149 : vector<2x1xf32>
    %151 = vector.broadcast %150 : vector<2x1xf32> to vector<2x32xf32>
    %152 = arith.mulf %147, %151 : vector<2x32xf32>
    %153 = vector.broadcast %1 : vector<1x32xf32> to vector<2x32xf32>
    %154 = arith.mulf %152, %153 : vector<2x32xf32>
    %155 = vector.broadcast %2 : vector<1x32xf32> to vector<2x32xf32>
    %156 = arith.addf %154, %155 : vector<2x32xf32>
    %cst_77 = arith.constant 0.000000e+00 : f32
    %157 = vector.broadcast %cst_77 : f32 to vector<2x32xf32>
    %158 = arith.cmpf oge, %156, %157 : vector<2x32xf32>
    %cst_78 = arith.constant 2.000000e-02 : f32
    %159 = vector.broadcast %cst_78 : f32 to vector<2x32xf32>
    %160 = arith.mulf %159, %156 : vector<2x32xf32>
    %161 = arith.select %158, %156, %160 : vector<2x32xi1>, vector<2x32xf32>
    %c0_79 = arith.constant 0 : index
    %c0_80 = arith.constant 0 : index
    %162 = vector.load %arg4[%c0_79, %c0_80] : memref<32x128xf32, #tpu.memory_space<vmem>>, vector<32x128xf32>
    %cst_81 = arith.constant dense<0.000000e+00> : vector<2x128xf32>
    %163 = tpu.matmul %161, %162, %cst_81 {dimension_numbers = #tpu.dot_dimension_numbers<[1], [0], [0], [1], [0, 0, 1, 1], [], []>} : vector<2x32xf32>, vector<32x128xf32>, vector<2x128xf32> -> vector<2x128xf32>
    %164 = vector.broadcast %8 : vector<1x128xf32> to vector<2x128xf32>
    %165 = arith.addf %163, %164 : vector<2x128xf32>
    %c3_82 = arith.constant 3 : index
    %c0_83 = arith.constant 0 : index
    %c0_84 = arith.constant 0 : index
    %166 = vector.load %arg9[%c3_82, %c0_83, %c0_84] : memref<8x2x128xf32, #tpu.memory_space<vmem>>, vector<1x2x128xf32>
    %167 = vector.shape_cast %166 : vector<1x2x128xf32> to vector<2x128xf32>
    %168 = vector.shape_cast %165 : vector<2x128xf32> to vector<1x2x128xf32>
    tpu.vector_store %arg9[%c3_82, %c0_83, %c0_84], %168 {strides = array<i32>} : memref<8x2x128xf32, #tpu.memory_space<vmem>>, vector<1x2x128xf32>,
    %c4_85 = arith.constant 4 : index
    %c0_86 = arith.constant 0 : index
    %c0_87 = arith.constant 0 : index
    %169 = vector.load %arg1[%c4_85, %c0_86, %c0_87] : memref<8x2x16xf32, #tpu.memory_space<vmem>>, vector<1x2x16xf32>
    %170 = vector.shape_cast %169 : vector<1x2x16xf32> to vector<2x16xf32>
    %c0_88 = arith.constant 0 : index
    %c0_89 = arith.constant 0 : index
    %171 = vector.load %arg3[%c0_88, %c0_89] : memref<16x32xf32, #tpu.memory_space<vmem>>, vector<16x32xf32>
    %cst_90 = arith.constant dense<0.000000e+00> : vector<2x32xf32>
    %172 = tpu.matmul %170, %171, %cst_90 {dimension_numbers = #tpu.dot_dimension_numbers<[1], [0], [0], [1], [0, 0, 1, 1], [], []>} : vector<2x16xf32>, vector<16x32xf32>, vector<2x32xf32> -> vector<2x32xf32>
    %173 = vector.broadcast %0 : vector<1x32xf32> to vector<2x32xf32>
    %174 = arith.addf %172, %173 : vector<2x32xf32>
    %cst_91 = arith.constant dense<0.000000e+00> : vector<2xf32>
    %175 = vector.multi_reduction <add>, %174, %cst_91 [1] : vector<2x32xf32> to vector<2xf32>
    %176 = vector.shape_cast %175 : vector<2xf32> to vector<2x1xf32>
    %cst_92 = arith.constant 3.200000e+01 : f32
    %177 = vector.broadcast %cst_92 : f32 to vector<2x1xf32>
    %178 = arith.divf %176, %177 : vector<2x1xf32>
    %179 = vector.broadcast %178 : vector<2x1xf32> to vector<2x32xf32>
    %180 = arith.subf %174, %179 : vector<2x32xf32>
    %181 = arith.mulf %180, %180 : vector<2x32xf32>
    %cst_93 = arith.constant dense<0.000000e+00> : vector<2xf32>
    %182 = vector.multi_reduction <add>, %181, %cst_93 [1] : vector<2x32xf32> to vector<2xf32>
    %183 = vector.shape_cast %182 : vector<2xf32> to vector<2x1xf32>
    %cst_94 = arith.constant 3.200000e+01 : f32
    %184 = vector.broadcast %cst_94 : f32 to vector<2x1xf32>
    %185 = arith.divf %183, %184 : vector<2x1xf32>
    %186 = vector.broadcast %178 : vector<2x1xf32> to vector<2x32xf32>
    %187 = arith.subf %174, %186 : vector<2x32xf32>
    %cst_95 = arith.constant 9.99999974E-6 : f32
    %188 = vector.broadcast %cst_95 : f32 to vector<2x1xf32>
    %189 = arith.addf %185, %188 : vector<2x1xf32>
    %190 = math.rsqrt %189 : vector<2x1xf32>
    %191 = vector.broadcast %190 : vector<2x1xf32> to vector<2x32xf32>
    %192 = arith.mulf %187, %191 : vector<2x32xf32>
    %193 = vector.broadcast %1 : vector<1x32xf32> to vector<2x32xf32>
    %194 = arith.mulf %192, %193 : vector<2x32xf32>
    %195 = vector.broadcast %2 : vector<1x32xf32> to vector<2x32xf32>
    %196 = arith.addf %194, %195 : vector<2x32xf32>
    %cst_96 = arith.constant 0.000000e+00 : f32
    %197 = vector.broadcast %cst_96 : f32 to vector<2x32xf32>
    %198 = arith.cmpf oge, %196, %197 : vector<2x32xf32>
    %cst_97 = arith.constant 2.000000e-02 : f32
    %199 = vector.broadcast %cst_97 : f32 to vector<2x32xf32>
    %200 = arith.mulf %199, %196 : vector<2x32xf32>
    %201 = arith.select %198, %196, %200 : vector<2x32xi1>, vector<2x32xf32>
    %c0_98 = arith.constant 0 : index
    %c0_99 = arith.constant 0 : index
    %202 = vector.load %arg4[%c0_98, %c0_99] : memref<32x128xf32, #tpu.memory_space<vmem>>, vector<32x128xf32>
    %cst_100 = arith.constant dense<0.000000e+00> : vector<2x128xf32>
    %203 = tpu.matmul %201, %202, %cst_100 {dimension_numbers = #tpu.dot_dimension_numbers<[1], [0], [0], [1], [0, 0, 1, 1], [], []>} : vector<2x32xf32>, vector<32x128xf32>, vector<2x128xf32> -> vector<2x128xf32>
    %204 = vector.broadcast %8 : vector<1x128xf32> to vector<2x128xf32>
    %205 = arith.addf %203, %204 : vector<2x128xf32>
    %c4_101 = arith.constant 4 : index
    %c0_102 = arith.constant 0 : index
    %c0_103 = arith.constant 0 : index
    %206 = vector.load %arg9[%c4_101, %c0_102, %c0_103] : memref<8x2x128xf32, #tpu.memory_space<vmem>>, vector<1x2x128xf32>
    %207 = vector.shape_cast %206 : vector<1x2x128xf32> to vector<2x128xf32>
    %208 = vector.shape_cast %205 : vector<2x128xf32> to vector<1x2x128xf32>
    tpu.vector_store %arg9[%c4_101, %c0_102, %c0_103], %208 {strides = array<i32>} : memref<8x2x128xf32, #tpu.memory_space<vmem>>, vector<1x2x128xf32>,
    %c5_104 = arith.constant 5 : index
    %c0_105 = arith.constant 0 : index
    %c0_106 = arith.constant 0 : index
    %209 = vector.load %arg1[%c5_104, %c0_105, %c0_106] : memref<8x2x16xf32, #tpu.memory_space<vmem>>, vector<1x2x16xf32>
    %210 = vector.shape_cast %209 : vector<1x2x16xf32> to vector<2x16xf32>
    %c0_107 = arith.constant 0 : index
    %c0_108 = arith.constant 0 : index
    %211 = vector.load %arg3[%c0_107, %c0_108] : memref<16x32xf32, #tpu.memory_space<vmem>>, vector<16x32xf32>
    %cst_109 = arith.constant dense<0.000000e+00> : vector<2x32xf32>
    %212 = tpu.matmul %210, %211, %cst_109 {dimension_numbers = #tpu.dot_dimension_numbers<[1], [0], [0], [1], [0, 0, 1, 1], [], []>} : vector<2x16xf32>, vector<16x32xf32>, vector<2x32xf32> -> vector<2x32xf32>
    %213 = vector.broadcast %0 : vector<1x32xf32> to vector<2x32xf32>
    %214 = arith.addf %212, %213 : vector<2x32xf32>
    %cst_110 = arith.constant dense<0.000000e+00> : vector<2xf32>
    %215 = vector.multi_reduction <add>, %214, %cst_110 [1] : vector<2x32xf32> to vector<2xf32>
    %216 = vector.shape_cast %215 : vector<2xf32> to vector<2x1xf32>
    %cst_111 = arith.constant 3.200000e+01 : f32
    %217 = vector.broadcast %cst_111 : f32 to vector<2x1xf32>
    %218 = arith.divf %216, %217 : vector<2x1xf32>
    %219 = vector.broadcast %218 : vector<2x1xf32> to vector<2x32xf32>
    %220 = arith.subf %214, %219 : vector<2x32xf32>
    %221 = arith.mulf %220, %220 : vector<2x32xf32>
    %cst_112 = arith.constant dense<0.000000e+00> : vector<2xf32>
    %222 = vector.multi_reduction <add>, %221, %cst_112 [1] : vector<2x32xf32> to vector<2xf32>
    %223 = vector.shape_cast %222 : vector<2xf32> to vector<2x1xf32>
    %cst_113 = arith.constant 3.200000e+01 : f32
    %224 = vector.broadcast %cst_113 : f32 to vector<2x1xf32>
    %225 = arith.divf %223, %224 : vector<2x1xf32>
    %226 = vector.broadcast %218 : vector<2x1xf32> to vector<2x32xf32>
    %227 = arith.subf %214, %226 : vector<2x32xf32>
    %cst_114 = arith.constant 9.99999974E-6 : f32
    %228 = vector.broadcast %cst_114 : f32 to vector<2x1xf32>
    %229 = arith.addf %225, %228 : vector<2x1xf32>
    %230 = math.rsqrt %229 : vector<2x1xf32>
    %231 = vector.broadcast %230 : vector<2x1xf32> to vector<2x32xf32>
    %232 = arith.mulf %227, %231 : vector<2x32xf32>
    %233 = vector.broadcast %1 : vector<1x32xf32> to vector<2x32xf32>
    %234 = arith.mulf %232, %233 : vector<2x32xf32>
    %235 = vector.broadcast %2 : vector<1x32xf32> to vector<2x32xf32>
    %236 = arith.addf %234, %235 : vector<2x32xf32>
    %cst_115 = arith.constant 0.000000e+00 : f32
    %237 = vector.broadcast %cst_115 : f32 to vector<2x32xf32>
    %238 = arith.cmpf oge, %236, %237 : vector<2x32xf32>
    %cst_116 = arith.constant 2.000000e-02 : f32
    %239 = vector.broadcast %cst_116 : f32 to vector<2x32xf32>
    %240 = arith.mulf %239, %236 : vector<2x32xf32>
    %241 = arith.select %238, %236, %240 : vector<2x32xi1>, vector<2x32xf32>
    %c0_117 = arith.constant 0 : index
    %c0_118 = arith.constant 0 : index
    %242 = vector.load %arg4[%c0_117, %c0_118] : memref<32x128xf32, #tpu.memory_space<vmem>>, vector<32x128xf32>
    %cst_119 = arith.constant dense<0.000000e+00> : vector<2x128xf32>
    %243 = tpu.matmul %241, %242, %cst_119 {dimension_numbers = #tpu.dot_dimension_numbers<[1], [0], [0], [1], [0, 0, 1, 1], [], []>} : vector<2x32xf32>, vector<32x128xf32>, vector<2x128xf32> -> vector<2x128xf32>
    %244 = vector.broadcast %8 : vector<1x128xf32> to vector<2x128xf32>
    %245 = arith.addf %243, %244 : vector<2x128xf32>
    %c5_120 = arith.constant 5 : index
    %c0_121 = arith.constant 0 : index
    %c0_122 = arith.constant 0 : index
    %246 = vector.load %arg9[%c5_120, %c0_121, %c0_122] : memref<8x2x128xf32, #tpu.memory_space<vmem>>, vector<1x2x128xf32>
    %247 = vector.shape_cast %246 : vector<1x2x128xf32> to vector<2x128xf32>
    %248 = vector.shape_cast %245 : vector<2x128xf32> to vector<1x2x128xf32>
    tpu.vector_store %arg9[%c5_120, %c0_121, %c0_122], %248 {strides = array<i32>} : memref<8x2x128xf32, #tpu.memory_space<vmem>>, vector<1x2x128xf32>,
    %c6_123 = arith.constant 6 : index
    %c0_124 = arith.constant 0 : index
    %c0_125 = arith.constant 0 : index
    %249 = vector.load %arg1[%c6_123, %c0_124, %c0_125] : memref<8x2x16xf32, #tpu.memory_space<vmem>>, vector<1x2x16xf32>
    %250 = vector.shape_cast %249 : vector<1x2x16xf32> to vector<2x16xf32>
    %c0_126 = arith.constant 0 : index
    %c0_127 = arith.constant 0 : index
    %251 = vector.load %arg3[%c0_126, %c0_127] : memref<16x32xf32, #tpu.memory_space<vmem>>, vector<16x32xf32>
    %cst_128 = arith.constant dense<0.000000e+00> : vector<2x32xf32>
    %252 = tpu.matmul %250, %251, %cst_128 {dimension_numbers = #tpu.dot_dimension_numbers<[1], [0], [0], [1], [0, 0, 1, 1], [], []>} : vector<2x16xf32>, vector<16x32xf32>, vector<2x32xf32> -> vector<2x32xf32>
    %253 = vector.broadcast %0 : vector<1x32xf32> to vector<2x32xf32>
    %254 = arith.addf %252, %253 : vector<2x32xf32>
    %cst_129 = arith.constant dense<0.000000e+00> : vector<2xf32>
    %255 = vector.multi_reduction <add>, %254, %cst_129 [1] : vector<2x32xf32> to vector<2xf32>
    %256 = vector.shape_cast %255 : vector<2xf32> to vector<2x1xf32>
    %cst_130 = arith.constant 3.200000e+01 : f32
    %257 = vector.broadcast %cst_130 : f32 to vector<2x1xf32>
    %258 = arith.divf %256, %257 : vector<2x1xf32>
    %259 = vector.broadcast %258 : vector<2x1xf32> to vector<2x32xf32>
    %260 = arith.subf %254, %259 : vector<2x32xf32>
    %261 = arith.mulf %260, %260 : vector<2x32xf32>
    %cst_131 = arith.constant dense<0.000000e+00> : vector<2xf32>
    %262 = vector.multi_reduction <add>, %261, %cst_131 [1] : vector<2x32xf32> to vector<2xf32>
    %263 = vector.shape_cast %262 : vector<2xf32> to vector<2x1xf32>
    %cst_132 = arith.constant 3.200000e+01 : f32
    %264 = vector.broadcast %cst_132 : f32 to vector<2x1xf32>
    %265 = arith.divf %263, %264 : vector<2x1xf32>
    %266 = vector.broadcast %258 : vector<2x1xf32> to vector<2x32xf32>
    %267 = arith.subf %254, %266 : vector<2x32xf32>
    %cst_133 = arith.constant 9.99999974E-6 : f32
    %268 = vector.broadcast %cst_133 : f32 to vector<2x1xf32>
    %269 = arith.addf %265, %268 : vector<2x1xf32>
    %270 = math.rsqrt %269 : vector<2x1xf32>
    %271 = vector.broadcast %270 : vector<2x1xf32> to vector<2x32xf32>
    %272 = arith.mulf %267, %271 : vector<2x32xf32>
    %273 = vector.broadcast %1 : vector<1x32xf32> to vector<2x32xf32>
    %274 = arith.mulf %272, %273 : vector<2x32xf32>
    %275 = vector.broadcast %2 : vector<1x32xf32> to vector<2x32xf32>
    %276 = arith.addf %274, %275 : vector<2x32xf32>
    %cst_134 = arith.constant 0.000000e+00 : f32
    %277 = vector.broadcast %cst_134 : f32 to vector<2x32xf32>
    %278 = arith.cmpf oge, %276, %277 : vector<2x32xf32>
    %cst_135 = arith.constant 2.000000e-02 : f32
    %279 = vector.broadcast %cst_135 : f32 to vector<2x32xf32>
    %280 = arith.mulf %279, %276 : vector<2x32xf32>
    %281 = arith.select %278, %276, %280 : vector<2x32xi1>, vector<2x32xf32>
    %c0_136 = arith.constant 0 : index
    %c0_137 = arith.constant 0 : index
    %282 = vector.load %arg4[%c0_136, %c0_137] : memref<32x128xf32, #tpu.memory_space<vmem>>, vector<32x128xf32>
    %cst_138 = arith.constant dense<0.000000e+00> : vector<2x128xf32>
    %283 = tpu.matmul %281, %282, %cst_138 {dimension_numbers = #tpu.dot_dimension_numbers<[1], [0], [0], [1], [0, 0, 1, 1], [], []>} : vector<2x32xf32>, vector<32x128xf32>, vector<2x128xf32> -> vector<2x128xf32>
    %284 = vector.broadcast %8 : vector<1x128xf32> to vector<2x128xf32>
    %285 = arith.addf %283, %284 : vector<2x128xf32>
    %c6_139 = arith.constant 6 : index
    %c0_140 = arith.constant 0 : index
    %c0_141 = arith.constant 0 : index
    %286 = vector.load %arg9[%c6_139, %c0_140, %c0_141] : memref<8x2x128xf32, #tpu.memory_space<vmem>>, vector<1x2x128xf32>
    %287 = vector.shape_cast %286 : vector<1x2x128xf32> to vector<2x128xf32>
    %288 = vector.shape_cast %285 : vector<2x128xf32> to vector<1x2x128xf32>
    tpu.vector_store %arg9[%c6_139, %c0_140, %c0_141], %288 {strides = array<i32>} : memref<8x2x128xf32, #tpu.memory_space<vmem>>, vector<1x2x128xf32>,
    %c7_142 = arith.constant 7 : index
    %c0_143 = arith.constant 0 : index
    %c0_144 = arith.constant 0 : index
    %289 = vector.load %arg1[%c7_142, %c0_143, %c0_144] : memref<8x2x16xf32, #tpu.memory_space<vmem>>, vector<1x2x16xf32>
    %290 = vector.shape_cast %289 : vector<1x2x16xf32> to vector<2x16xf32>
    %c0_145 = arith.constant 0 : index
    %c0_146 = arith.constant 0 : index
    %291 = vector.load %arg3[%c0_145, %c0_146] : memref<16x32xf32, #tpu.memory_space<vmem>>, vector<16x32xf32>
    %cst_147 = arith.constant dense<0.000000e+00> : vector<2x32xf32>
    %292 = tpu.matmul %290, %291, %cst_147 {dimension_numbers = #tpu.dot_dimension_numbers<[1], [0], [0], [1], [0, 0, 1, 1], [], []>} : vector<2x16xf32>, vector<16x32xf32>, vector<2x32xf32> -> vector<2x32xf32>
    %293 = vector.broadcast %0 : vector<1x32xf32> to vector<2x32xf32>
    %294 = arith.addf %292, %293 : vector<2x32xf32>
    %cst_148 = arith.constant dense<0.000000e+00> : vector<2xf32>
    %295 = vector.multi_reduction <add>, %294, %cst_148 [1] : vector<2x32xf32> to vector<2xf32>
    %296 = vector.shape_cast %295 : vector<2xf32> to vector<2x1xf32>
    %cst_149 = arith.constant 3.200000e+01 : f32
    %297 = vector.broadcast %cst_149 : f32 to vector<2x1xf32>
    %298 = arith.divf %296, %297 : vector<2x1xf32>
    %299 = vector.broadcast %298 : vector<2x1xf32> to vector<2x32xf32>
    %300 = arith.subf %294, %299 : vector<2x32xf32>
    %301 = arith.mulf %300, %300 : vector<2x32xf32>
    %cst_150 = arith.constant dense<0.000000e+00> : vector<2xf32>
    %302 = vector.multi_reduction <add>, %301, %cst_150 [1] : vector<2x32xf32> to vector<2xf32>
    %303 = vector.shape_cast %302 : vector<2xf32> to vector<2x1xf32>
    %cst_151 = arith.constant 3.200000e+01 : f32
    %304 = vector.broadcast %cst_151 : f32 to vector<2x1xf32>
    %305 = arith.divf %303, %304 : vector<2x1xf32>
    %306 = vector.broadcast %298 : vector<2x1xf32> to vector<2x32xf32>
    %307 = arith.subf %294, %306 : vector<2x32xf32>
    %cst_152 = arith.constant 9.99999974E-6 : f32
    %308 = vector.broadcast %cst_152 : f32 to vector<2x1xf32>
    %309 = arith.addf %305, %308 : vector<2x1xf32>
    %310 = math.rsqrt %309 : vector<2x1xf32>
    %311 = vector.broadcast %310 : vector<2x1xf32> to vector<2x32xf32>
    %312 = arith.mulf %307, %311 : vector<2x32xf32>
    %313 = vector.broadcast %1 : vector<1x32xf32> to vector<2x32xf32>
    %314 = arith.mulf %312, %313 : vector<2x32xf32>
    %315 = vector.broadcast %2 : vector<1x32xf32> to vector<2x32xf32>
    %316 = arith.addf %314, %315 : vector<2x32xf32>
    %cst_153 = arith.constant 0.000000e+00 : f32
    %317 = vector.broadcast %cst_153 : f32 to vector<2x32xf32>
    %318 = arith.cmpf oge, %316, %317 : vector<2x32xf32>
    %cst_154 = arith.constant 2.000000e-02 : f32
    %319 = vector.broadcast %cst_154 : f32 to vector<2x32xf32>
    %320 = arith.mulf %319, %316 : vector<2x32xf32>
    %321 = arith.select %318, %316, %320 : vector<2x32xi1>, vector<2x32xf32>
    %c0_155 = arith.constant 0 : index
    %c0_156 = arith.constant 0 : index
    %322 = vector.load %arg4[%c0_155, %c0_156] : memref<32x128xf32, #tpu.memory_space<vmem>>, vector<32x128xf32>
    %cst_157 = arith.constant dense<0.000000e+00> : vector<2x128xf32>
    %323 = tpu.matmul %321, %322, %cst_157 {dimension_numbers = #tpu.dot_dimension_numbers<[1], [0], [0], [1], [0, 0, 1, 1], [], []>} : vector<2x32xf32>, vector<32x128xf32>, vector<2x128xf32> -> vector<2x128xf32>
    %324 = vector.broadcast %8 : vector<1x128xf32> to vector<2x128xf32>
    %325 = arith.addf %323, %324 : vector<2x128xf32>
    %c7_158 = arith.constant 7 : index
    %c0_159 = arith.constant 0 : index
    %c0_160 = arith.constant 0 : index
    %326 = vector.load %arg9[%c7_158, %c0_159, %c0_160] : memref<8x2x128xf32, #tpu.memory_space<vmem>>, vector<1x2x128xf32>
    %327 = vector.shape_cast %326 : vector<1x2x128xf32> to vector<2x128xf32>
    %328 = vector.shape_cast %325 : vector<2x128xf32> to vector<1x2x128xf32>
    tpu.vector_store %arg9[%c7_158, %c0_159, %c0_160], %328 {strides = array<i32>} : memref<8x2x128xf32, #tpu.memory_space<vmem>>, vector<1x2x128xf32>,
    %c0_161 = arith.constant 0 : index
    %c0_162 = arith.constant 0 : index
    %329 = vector.load %arg2[%c0_161, %c0_162] : memref<2x32xf32, #tpu.memory_space<vmem>>, vector<2x32xf32>
    %c0_i32 = arith.constant 0 : i32
    %c0_163 = arith.constant 0 : index
    %c0_164 = arith.constant 0 : index
    %330 = vector.load %arg5[%c0_163, %c0_164] : memref<32x128xf32, #tpu.memory_space<vmem>>, vector<32x128xf32>
    %cst_165 = arith.constant dense<0.000000e+00> : vector<2x128xf32>
    %331 = tpu.matmul %329, %330, %cst_165 {dimension_numbers = #tpu.dot_dimension_numbers<[1], [0], [0], [1], [0, 0, 1, 1], [], []>} : vector<2x32xf32>, vector<32x128xf32>, vector<2x128xf32> -> vector<2x128xf32>
    %332 = arith.index_cast %c0_i32 : i32 to index
    %c0_166 = arith.constant 0 : index
    %c0_167 = arith.constant 0 : index
    %333 = vector.load %arg9[%332, %c0_166, %c0_167] : memref<8x2x128xf32, #tpu.memory_space<vmem>>, vector<1x2x128xf32>
    %334 = vector.shape_cast %333 : vector<1x2x128xf32> to vector<2x128xf32>
    %335 = vector.extract_strided_slice %334 {offsets = [0, 0], sizes = [2, 32], strides = [1, 1]} : vector<2x128xf32> to vector<2x32xf32>
    %336 = vector.extract_strided_slice %331 {offsets = [0, 0], sizes = [2, 32], strides = [1, 1]} : vector<2x128xf32> to vector<2x32xf32>
    %337 = arith.addf %335, %336 : vector<2x32xf32>
    %338 = arith.negf %337 : vector<2x32xf32>
    %339 = math.exp %338 : vector<2x32xf32>
    %cst_168 = arith.constant 1.000000e+00 : f32
    %340 = vector.broadcast %cst_168 : f32 to vector<2x32xf32>
    %341 = arith.addf %340, %339 : vector<2x32xf32>
    %342 = arith.divf %340, %341 : vector<2x32xf32>
    %343 = vector.extract_strided_slice %334 {offsets = [0, 32], sizes = [2, 32], strides = [1, 1]} : vector<2x128xf32> to vector<2x32xf32>
    %344 = vector.extract_strided_slice %331 {offsets = [0, 32], sizes = [2, 32], strides = [1, 1]} : vector<2x128xf32> to vector<2x32xf32>
    %345 = arith.addf %343, %344 : vector<2x32xf32>
    %346 = arith.negf %345 : vector<2x32xf32>
    %347 = math.exp %346 : vector<2x32xf32>
    %cst_169 = arith.constant 1.000000e+00 : f32
    %348 = vector.broadcast %cst_169 : f32 to vector<2x32xf32>
    %349 = arith.addf %348, %347 : vector<2x32xf32>
    %350 = arith.divf %348, %349 : vector<2x32xf32>
    %351 = vector.extract_strided_slice %334 {offsets = [0, 64], sizes = [2, 32], strides = [1, 1]} : vector<2x128xf32> to vector<2x32xf32>
    %352 = vector.extract_strided_slice %331 {offsets = [0, 64], sizes = [2, 32], strides = [1, 1]} : vector<2x128xf32> to vector<2x32xf32>
    %353 = vector.broadcast %5 : vector<1x32xf32> to vector<2x32xf32>
    %354 = arith.addf %352, %353 : vector<2x32xf32>
    %355 = arith.mulf %342, %354 : vector<2x32xf32>
    %356 = arith.addf %351, %355 : vector<2x32xf32>
    %357 = math.tanh %356 : vector<2x32xf32>
    %cst_170 = arith.constant 1.000000e+00 : f32
    %358 = vector.broadcast %cst_170 : f32 to vector<2x32xf32>
    %359 = arith.subf %358, %350 : vector<2x32xf32>
    %360 = arith.mulf %359, %357 : vector<2x32xf32>
    %361 = arith.mulf %350, %329 : vector<2x32xf32>
    %362 = arith.addf %360, %361 : vector<2x32xf32>
    %c1_i32 = arith.constant 1 : i32
    %c0_171 = arith.constant 0 : index
    %c0_172 = arith.constant 0 : index
    %363 = vector.load %arg5[%c0_171, %c0_172] : memref<32x128xf32, #tpu.memory_space<vmem>>, vector<32x128xf32>
    %cst_173 = arith.constant dense<0.000000e+00> : vector<2x128xf32>
    %364 = tpu.matmul %362, %363, %cst_173 {dimension_numbers = #tpu.dot_dimension_numbers<[1], [0], [0], [1], [0, 0, 1, 1], [], []>} : vector<2x32xf32>, vector<32x128xf32>, vector<2x128xf32> -> vector<2x128xf32>
    %365 = arith.index_cast %c1_i32 : i32 to index
    %c0_174 = arith.constant 0 : index
    %c0_175 = arith.constant 0 : index
    %366 = vector.load %arg9[%365, %c0_174, %c0_175] : memref<8x2x128xf32, #tpu.memory_space<vmem>>, vector<1x2x128xf32>
    %367 = vector.shape_cast %366 : vector<1x2x128xf32> to vector<2x128xf32>
    %368 = vector.extract_strided_slice %367 {offsets = [0, 0], sizes = [2, 32], strides = [1, 1]} : vector<2x128xf32> to vector<2x32xf32>
    %369 = vector.extract_strided_slice %364 {offsets = [0, 0], sizes = [2, 32], strides = [1, 1]} : vector<2x128xf32> to vector<2x32xf32>
    %370 = arith.addf %368, %369 : vector<2x32xf32>
    %371 = arith.negf %370 : vector<2x32xf32>
    %372 = math.exp %371 : vector<2x32xf32>
    %cst_176 = arith.constant 1.000000e+00 : f32
    %373 = vector.broadcast %cst_176 : f32 to vector<2x32xf32>
    %374 = arith.addf %373, %372 : vector<2x32xf32>
    %375 = arith.divf %373, %374 : vector<2x32xf32>
    %376 = vector.extract_strided_slice %367 {offsets = [0, 32], sizes = [2, 32], strides = [1, 1]} : vector<2x128xf32> to vector<2x32xf32>
    %377 = vector.extract_strided_slice %364 {offsets = [0, 32], sizes = [2, 32], strides = [1, 1]} : vector<2x128xf32> to vector<2x32xf32>
    %378 = arith.addf %376, %377 : vector<2x32xf32>
    %379 = arith.negf %378 : vector<2x32xf32>
    %380 = math.exp %379 : vector<2x32xf32>
    %cst_177 = arith.constant 1.000000e+00 : f32
    %381 = vector.broadcast %cst_177 : f32 to vector<2x32xf32>
    %382 = arith.addf %381, %380 : vector<2x32xf32>
    %383 = arith.divf %381, %382 : vector<2x32xf32>
    %384 = vector.extract_strided_slice %367 {offsets = [0, 64], sizes = [2, 32], strides = [1, 1]} : vector<2x128xf32> to vector<2x32xf32>
    %385 = vector.extract_strided_slice %364 {offsets = [0, 64], sizes = [2, 32], strides = [1, 1]} : vector<2x128xf32> to vector<2x32xf32>
    %386 = vector.broadcast %5 : vector<1x32xf32> to vector<2x32xf32>
    %387 = arith.addf %385, %386 : vector<2x32xf32>
    %388 = arith.mulf %375, %387 : vector<2x32xf32>
    %389 = arith.addf %384, %388 : vector<2x32xf32>
    %390 = math.tanh %389 : vector<2x32xf32>
    %cst_178 = arith.constant 1.000000e+00 : f32
    %391 = vector.broadcast %cst_178 : f32 to vector<2x32xf32>
    %392 = arith.subf %391, %383 : vector<2x32xf32>
    %393 = arith.mulf %392, %390 : vector<2x32xf32>
    %394 = arith.mulf %383, %362 : vector<2x32xf32>
    %395 = arith.addf %393, %394 : vector<2x32xf32>
    %c2_i32 = arith.constant 2 : i32
    %c0_179 = arith.constant 0 : index
    %c0_180 = arith.constant 0 : index
    %396 = vector.load %arg5[%c0_179, %c0_180] : memref<32x128xf32, #tpu.memory_space<vmem>>, vector<32x128xf32>
    %cst_181 = arith.constant dense<0.000000e+00> : vector<2x128xf32>
    %397 = tpu.matmul %395, %396, %cst_181 {dimension_numbers = #tpu.dot_dimension_numbers<[1], [0], [0], [1], [0, 0, 1, 1], [], []>} : vector<2x32xf32>, vector<32x128xf32>, vector<2x128xf32> -> vector<2x128xf32>
    %398 = arith.index_cast %c2_i32 : i32 to index
    %c0_182 = arith.constant 0 : index
    %c0_183 = arith.constant 0 : index
    %399 = vector.load %arg9[%398, %c0_182, %c0_183] : memref<8x2x128xf32, #tpu.memory_space<vmem>>, vector<1x2x128xf32>
    %400 = vector.shape_cast %399 : vector<1x2x128xf32> to vector<2x128xf32>
    %401 = vector.extract_strided_slice %400 {offsets = [0, 0], sizes = [2, 32], strides = [1, 1]} : vector<2x128xf32> to vector<2x32xf32>
    %402 = vector.extract_strided_slice %397 {offsets = [0, 0], sizes = [2, 32], strides = [1, 1]} : vector<2x128xf32> to vector<2x32xf32>
    %403 = arith.addf %401, %402 : vector<2x32xf32>
    %404 = arith.negf %403 : vector<2x32xf32>
    %405 = math.exp %404 : vector<2x32xf32>
    %cst_184 = arith.constant 1.000000e+00 : f32
    %406 = vector.broadcast %cst_184 : f32 to vector<2x32xf32>
    %407 = arith.addf %406, %405 : vector<2x32xf32>
    %408 = arith.divf %406, %407 : vector<2x32xf32>
    %409 = vector.extract_strided_slice %400 {offsets = [0, 32], sizes = [2, 32], strides = [1, 1]} : vector<2x128xf32> to vector<2x32xf32>
    %410 = vector.extract_strided_slice %397 {offsets = [0, 32], sizes = [2, 32], strides = [1, 1]} : vector<2x128xf32> to vector<2x32xf32>
    %411 = arith.addf %409, %410 : vector<2x32xf32>
    %412 = arith.negf %411 : vector<2x32xf32>
    %413 = math.exp %412 : vector<2x32xf32>
    %cst_185 = arith.constant 1.000000e+00 : f32
    %414 = vector.broadcast %cst_185 : f32 to vector<2x32xf32>
    %415 = arith.addf %414, %413 : vector<2x32xf32>
    %416 = arith.divf %414, %415 : vector<2x32xf32>
    %417 = vector.extract_strided_slice %400 {offsets = [0, 64], sizes = [2, 32], strides = [1, 1]} : vector<2x128xf32> to vector<2x32xf32>
    %418 = vector.extract_strided_slice %397 {offsets = [0, 64], sizes = [2, 32], strides = [1, 1]} : vector<2x128xf32> to vector<2x32xf32>
    %419 = vector.broadcast %5 : vector<1x32xf32> to vector<2x32xf32>
    %420 = arith.addf %418, %419 : vector<2x32xf32>
    %421 = arith.mulf %408, %420 : vector<2x32xf32>
    %422 = arith.addf %417, %421 : vector<2x32xf32>
    %423 = math.tanh %422 : vector<2x32xf32>
    %cst_186 = arith.constant 1.000000e+00 : f32
    %424 = vector.broadcast %cst_186 : f32 to vector<2x32xf32>
    %425 = arith.subf %424, %416 : vector<2x32xf32>
    %426 = arith.mulf %425, %423 : vector<2x32xf32>
    %427 = arith.mulf %416, %395 : vector<2x32xf32>
    %428 = arith.addf %426, %427 : vector<2x32xf32>
    %c3_i32 = arith.constant 3 : i32
    %c0_187 = arith.constant 0 : index
    %c0_188 = arith.constant 0 : index
    %429 = vector.load %arg5[%c0_187, %c0_188] : memref<32x128xf32, #tpu.memory_space<vmem>>, vector<32x128xf32>
    %cst_189 = arith.constant dense<0.000000e+00> : vector<2x128xf32>
    %430 = tpu.matmul %428, %429, %cst_189 {dimension_numbers = #tpu.dot_dimension_numbers<[1], [0], [0], [1], [0, 0, 1, 1], [], []>} : vector<2x32xf32>, vector<32x128xf32>, vector<2x128xf32> -> vector<2x128xf32>
    %431 = arith.index_cast %c3_i32 : i32 to index
    %c0_190 = arith.constant 0 : index
    %c0_191 = arith.constant 0 : index
    %432 = vector.load %arg9[%431, %c0_190, %c0_191] : memref<8x2x128xf32, #tpu.memory_space<vmem>>, vector<1x2x128xf32>
    %433 = vector.shape_cast %432 : vector<1x2x128xf32> to vector<2x128xf32>
    %434 = vector.extract_strided_slice %433 {offsets = [0, 0], sizes = [2, 32], strides = [1, 1]} : vector<2x128xf32> to vector<2x32xf32>
    %435 = vector.extract_strided_slice %430 {offsets = [0, 0], sizes = [2, 32], strides = [1, 1]} : vector<2x128xf32> to vector<2x32xf32>
    %436 = arith.addf %434, %435 : vector<2x32xf32>
    %437 = arith.negf %436 : vector<2x32xf32>
    %438 = math.exp %437 : vector<2x32xf32>
    %cst_192 = arith.constant 1.000000e+00 : f32
    %439 = vector.broadcast %cst_192 : f32 to vector<2x32xf32>
    %440 = arith.addf %439, %438 : vector<2x32xf32>
    %441 = arith.divf %439, %440 : vector<2x32xf32>
    %442 = vector.extract_strided_slice %433 {offsets = [0, 32], sizes = [2, 32], strides = [1, 1]} : vector<2x128xf32> to vector<2x32xf32>
    %443 = vector.extract_strided_slice %430 {offsets = [0, 32], sizes = [2, 32], strides = [1, 1]} : vector<2x128xf32> to vector<2x32xf32>
    %444 = arith.addf %442, %443 : vector<2x32xf32>
    %445 = arith.negf %444 : vector<2x32xf32>
    %446 = math.exp %445 : vector<2x32xf32>
    %cst_193 = arith.constant 1.000000e+00 : f32
    %447 = vector.broadcast %cst_193 : f32 to vector<2x32xf32>
    %448 = arith.addf %447, %446 : vector<2x32xf32>
    %449 = arith.divf %447, %448 : vector<2x32xf32>
    %450 = vector.extract_strided_slice %433 {offsets = [0, 64], sizes = [2, 32], strides = [1, 1]} : vector<2x128xf32> to vector<2x32xf32>
    %451 = vector.extract_strided_slice %430 {offsets = [0, 64], sizes = [2, 32], strides = [1, 1]} : vector<2x128xf32> to vector<2x32xf32>
    %452 = vector.broadcast %5 : vector<1x32xf32> to vector<2x32xf32>
    %453 = arith.addf %451, %452 : vector<2x32xf32>
    %454 = arith.mulf %441, %453 : vector<2x32xf32>
    %455 = arith.addf %450, %454 : vector<2x32xf32>
    %456 = math.tanh %455 : vector<2x32xf32>
    %cst_194 = arith.constant 1.000000e+00 : f32
    %457 = vector.broadcast %cst_194 : f32 to vector<2x32xf32>
    %458 = arith.subf %457, %449 : vector<2x32xf32>
    %459 = arith.mulf %458, %456 : vector<2x32xf32>
    %460 = arith.mulf %449, %428 : vector<2x32xf32>
    %461 = arith.addf %459, %460 : vector<2x32xf32>
    %c4_i32 = arith.constant 4 : i32
    %c0_195 = arith.constant 0 : index
    %c0_196 = arith.constant 0 : index
    %462 = vector.load %arg5[%c0_195, %c0_196] : memref<32x128xf32, #tpu.memory_space<vmem>>, vector<32x128xf32>
    %cst_197 = arith.constant dense<0.000000e+00> : vector<2x128xf32>
    %463 = tpu.matmul %461, %462, %cst_197 {dimension_numbers = #tpu.dot_dimension_numbers<[1], [0], [0], [1], [0, 0, 1, 1], [], []>} : vector<2x32xf32>, vector<32x128xf32>, vector<2x128xf32> -> vector<2x128xf32>
    %464 = arith.index_cast %c4_i32 : i32 to index
    %c0_198 = arith.constant 0 : index
    %c0_199 = arith.constant 0 : index
    %465 = vector.load %arg9[%464, %c0_198, %c0_199] : memref<8x2x128xf32, #tpu.memory_space<vmem>>, vector<1x2x128xf32>
    %466 = vector.shape_cast %465 : vector<1x2x128xf32> to vector<2x128xf32>
    %467 = vector.extract_strided_slice %466 {offsets = [0, 0], sizes = [2, 32], strides = [1, 1]} : vector<2x128xf32> to vector<2x32xf32>
    %468 = vector.extract_strided_slice %463 {offsets = [0, 0], sizes = [2, 32], strides = [1, 1]} : vector<2x128xf32> to vector<2x32xf32>
    %469 = arith.addf %467, %468 : vector<2x32xf32>
    %470 = arith.negf %469 : vector<2x32xf32>
    %471 = math.exp %470 : vector<2x32xf32>
    %cst_200 = arith.constant 1.000000e+00 : f32
    %472 = vector.broadcast %cst_200 : f32 to vector<2x32xf32>
    %473 = arith.addf %472, %471 : vector<2x32xf32>
    %474 = arith.divf %472, %473 : vector<2x32xf32>
    %475 = vector.extract_strided_slice %466 {offsets = [0, 32], sizes = [2, 32], strides = [1, 1]} : vector<2x128xf32> to vector<2x32xf32>
    %476 = vector.extract_strided_slice %463 {offsets = [0, 32], sizes = [2, 32], strides = [1, 1]} : vector<2x128xf32> to vector<2x32xf32>
    %477 = arith.addf %475, %476 : vector<2x32xf32>
    %478 = arith.negf %477 : vector<2x32xf32>
    %479 = math.exp %478 : vector<2x32xf32>
    %cst_201 = arith.constant 1.000000e+00 : f32
    %480 = vector.broadcast %cst_201 : f32 to vector<2x32xf32>
    %481 = arith.addf %480, %479 : vector<2x32xf32>
    %482 = arith.divf %480, %481 : vector<2x32xf32>
    %483 = vector.extract_strided_slice %466 {offsets = [0, 64], sizes = [2, 32], strides = [1, 1]} : vector<2x128xf32> to vector<2x32xf32>
    %484 = vector.extract_strided_slice %463 {offsets = [0, 64], sizes = [2, 32], strides = [1, 1]} : vector<2x128xf32> to vector<2x32xf32>
    %485 = vector.broadcast %5 : vector<1x32xf32> to vector<2x32xf32>
    %486 = arith.addf %484, %485 : vector<2x32xf32>
    %487 = arith.mulf %474, %486 : vector<2x32xf32>
    %488 = arith.addf %483, %487 : vector<2x32xf32>
    %489 = math.tanh %488 : vector<2x32xf32>
    %cst_202 = arith.constant 1.000000e+00 : f32
    %490 = vector.broadcast %cst_202 : f32 to vector<2x32xf32>
    %491 = arith.subf %490, %482 : vector<2x32xf32>
    %492 = arith.mulf %491, %489 : vector<2x32xf32>
    %493 = arith.mulf %482, %461 : vector<2x32xf32>
    %494 = arith.addf %492, %493 : vector<2x32xf32>
    %c5_i32 = arith.constant 5 : i32
    %c0_203 = arith.constant 0 : index
    %c0_204 = arith.constant 0 : index
    %495 = vector.load %arg5[%c0_203, %c0_204] : memref<32x128xf32, #tpu.memory_space<vmem>>, vector<32x128xf32>
    %cst_205 = arith.constant dense<0.000000e+00> : vector<2x128xf32>
    %496 = tpu.matmul %494, %495, %cst_205 {dimension_numbers = #tpu.dot_dimension_numbers<[1], [0], [0], [1], [0, 0, 1, 1], [], []>} : vector<2x32xf32>, vector<32x128xf32>, vector<2x128xf32> -> vector<2x128xf32>
    %497 = arith.index_cast %c5_i32 : i32 to index
    %c0_206 = arith.constant 0 : index
    %c0_207 = arith.constant 0 : index
    %498 = vector.load %arg9[%497, %c0_206, %c0_207] : memref<8x2x128xf32, #tpu.memory_space<vmem>>, vector<1x2x128xf32>
    %499 = vector.shape_cast %498 : vector<1x2x128xf32> to vector<2x128xf32>
    %500 = vector.extract_strided_slice %499 {offsets = [0, 0], sizes = [2, 32], strides = [1, 1]} : vector<2x128xf32> to vector<2x32xf32>
    %501 = vector.extract_strided_slice %496 {offsets = [0, 0], sizes = [2, 32], strides = [1, 1]} : vector<2x128xf32> to vector<2x32xf32>
    %502 = arith.addf %500, %501 : vector<2x32xf32>
    %503 = arith.negf %502 : vector<2x32xf32>
    %504 = math.exp %503 : vector<2x32xf32>
    %cst_208 = arith.constant 1.000000e+00 : f32
    %505 = vector.broadcast %cst_208 : f32 to vector<2x32xf32>
    %506 = arith.addf %505, %504 : vector<2x32xf32>
    %507 = arith.divf %505, %506 : vector<2x32xf32>
    %508 = vector.extract_strided_slice %499 {offsets = [0, 32], sizes = [2, 32], strides = [1, 1]} : vector<2x128xf32> to vector<2x32xf32>
    %509 = vector.extract_strided_slice %496 {offsets = [0, 32], sizes = [2, 32], strides = [1, 1]} : vector<2x128xf32> to vector<2x32xf32>
    %510 = arith.addf %508, %509 : vector<2x32xf32>
    %511 = arith.negf %510 : vector<2x32xf32>
    %512 = math.exp %511 : vector<2x32xf32>
    %cst_209 = arith.constant 1.000000e+00 : f32
    %513 = vector.broadcast %cst_209 : f32 to vector<2x32xf32>
    %514 = arith.addf %513, %512 : vector<2x32xf32>
    %515 = arith.divf %513, %514 : vector<2x32xf32>
    %516 = vector.extract_strided_slice %499 {offsets = [0, 64], sizes = [2, 32], strides = [1, 1]} : vector<2x128xf32> to vector<2x32xf32>
    %517 = vector.extract_strided_slice %496 {offsets = [0, 64], sizes = [2, 32], strides = [1, 1]} : vector<2x128xf32> to vector<2x32xf32>
    %518 = vector.broadcast %5 : vector<1x32xf32> to vector<2x32xf32>
    %519 = arith.addf %517, %518 : vector<2x32xf32>
    %520 = arith.mulf %507, %519 : vector<2x32xf32>
    %521 = arith.addf %516, %520 : vector<2x32xf32>
    %522 = math.tanh %521 : vector<2x32xf32>
    %cst_210 = arith.constant 1.000000e+00 : f32
    %523 = vector.broadcast %cst_210 : f32 to vector<2x32xf32>
    %524 = arith.subf %523, %515 : vector<2x32xf32>
    %525 = arith.mulf %524, %522 : vector<2x32xf32>
    %526 = arith.mulf %515, %494 : vector<2x32xf32>
    %527 = arith.addf %525, %526 : vector<2x32xf32>
    %c6_i32 = arith.constant 6 : i32
    %c0_211 = arith.constant 0 : index
    %c0_212 = arith.constant 0 : index
    %528 = vector.load %arg5[%c0_211, %c0_212] : memref<32x128xf32, #tpu.memory_space<vmem>>, vector<32x128xf32>
    %cst_213 = arith.constant dense<0.000000e+00> : vector<2x128xf32>
    %529 = tpu.matmul %527, %528, %cst_213 {dimension_numbers = #tpu.dot_dimension_numbers<[1], [0], [0], [1], [0, 0, 1, 1], [], []>} : vector<2x32xf32>, vector<32x128xf32>, vector<2x128xf32> -> vector<2x128xf32>
    %530 = arith.index_cast %c6_i32 : i32 to index
    %c0_214 = arith.constant 0 : index
    %c0_215 = arith.constant 0 : index
    %531 = vector.load %arg9[%530, %c0_214, %c0_215] : memref<8x2x128xf32, #tpu.memory_space<vmem>>, vector<1x2x128xf32>
    %532 = vector.shape_cast %531 : vector<1x2x128xf32> to vector<2x128xf32>
    %533 = vector.extract_strided_slice %532 {offsets = [0, 0], sizes = [2, 32], strides = [1, 1]} : vector<2x128xf32> to vector<2x32xf32>
    %534 = vector.extract_strided_slice %529 {offsets = [0, 0], sizes = [2, 32], strides = [1, 1]} : vector<2x128xf32> to vector<2x32xf32>
    %535 = arith.addf %533, %534 : vector<2x32xf32>
    %536 = arith.negf %535 : vector<2x32xf32>
    %537 = math.exp %536 : vector<2x32xf32>
    %cst_216 = arith.constant 1.000000e+00 : f32
    %538 = vector.broadcast %cst_216 : f32 to vector<2x32xf32>
    %539 = arith.addf %538, %537 : vector<2x32xf32>
    %540 = arith.divf %538, %539 : vector<2x32xf32>
    %541 = vector.extract_strided_slice %532 {offsets = [0, 32], sizes = [2, 32], strides = [1, 1]} : vector<2x128xf32> to vector<2x32xf32>
    %542 = vector.extract_strided_slice %529 {offsets = [0, 32], sizes = [2, 32], strides = [1, 1]} : vector<2x128xf32> to vector<2x32xf32>
    %543 = arith.addf %541, %542 : vector<2x32xf32>
    %544 = arith.negf %543 : vector<2x32xf32>
    %545 = math.exp %544 : vector<2x32xf32>
    %cst_217 = arith.constant 1.000000e+00 : f32
    %546 = vector.broadcast %cst_217 : f32 to vector<2x32xf32>
    %547 = arith.addf %546, %545 : vector<2x32xf32>
    %548 = arith.divf %546, %547 : vector<2x32xf32>
    %549 = vector.extract_strided_slice %532 {offsets = [0, 64], sizes = [2, 32], strides = [1, 1]} : vector<2x128xf32> to vector<2x32xf32>
    %550 = vector.extract_strided_slice %529 {offsets = [0, 64], sizes = [2, 32], strides = [1, 1]} : vector<2x128xf32> to vector<2x32xf32>
    %551 = vector.broadcast %5 : vector<1x32xf32> to vector<2x32xf32>
    %552 = arith.addf %550, %551 : vector<2x32xf32>
    %553 = arith.mulf %540, %552 : vector<2x32xf32>
    %554 = arith.addf %549, %553 : vector<2x32xf32>
    %555 = math.tanh %554 : vector<2x32xf32>
    %cst_218 = arith.constant 1.000000e+00 : f32
    %556 = vector.broadcast %cst_218 : f32 to vector<2x32xf32>
    %557 = arith.subf %556, %548 : vector<2x32xf32>
    %558 = arith.mulf %557, %555 : vector<2x32xf32>
    %559 = arith.mulf %548, %527 : vector<2x32xf32>
    %560 = arith.addf %558, %559 : vector<2x32xf32>
    %c7_i32 = arith.constant 7 : i32
    %c0_219 = arith.constant 0 : index
    %c0_220 = arith.constant 0 : index
    %561 = vector.load %arg5[%c0_219, %c0_220] : memref<32x128xf32, #tpu.memory_space<vmem>>, vector<32x128xf32>
    %cst_221 = arith.constant dense<0.000000e+00> : vector<2x128xf32>
    %562 = tpu.matmul %560, %561, %cst_221 {dimension_numbers = #tpu.dot_dimension_numbers<[1], [0], [0], [1], [0, 0, 1, 1], [], []>} : vector<2x32xf32>, vector<32x128xf32>, vector<2x128xf32> -> vector<2x128xf32>
    %563 = arith.index_cast %c7_i32 : i32 to index
    %c0_222 = arith.constant 0 : index
    %c0_223 = arith.constant 0 : index
    %564 = vector.load %arg9[%563, %c0_222, %c0_223] : memref<8x2x128xf32, #tpu.memory_space<vmem>>, vector<1x2x128xf32>
    %565 = vector.shape_cast %564 : vector<1x2x128xf32> to vector<2x128xf32>
    %566 = vector.extract_strided_slice %565 {offsets = [0, 0], sizes = [2, 32], strides = [1, 1]} : vector<2x128xf32> to vector<2x32xf32>
    %567 = vector.extract_strided_slice %562 {offsets = [0, 0], sizes = [2, 32], strides = [1, 1]} : vector<2x128xf32> to vector<2x32xf32>
    %568 = arith.addf %566, %567 : vector<2x32xf32>
    %569 = arith.negf %568 : vector<2x32xf32>
    %570 = math.exp %569 : vector<2x32xf32>
    %cst_224 = arith.constant 1.000000e+00 : f32
    %571 = vector.broadcast %cst_224 : f32 to vector<2x32xf32>
    %572 = arith.addf %571, %570 : vector<2x32xf32>
    %573 = arith.divf %571, %572 : vector<2x32xf32>
    %574 = vector.extract_strided_slice %565 {offsets = [0, 32], sizes = [2, 32], strides = [1, 1]} : vector<2x128xf32> to vector<2x32xf32>
    %575 = vector.extract_strided_slice %562 {offsets = [0, 32], sizes = [2, 32], strides = [1, 1]} : vector<2x128xf32> to vector<2x32xf32>
    %576 = arith.addf %574, %575 : vector<2x32xf32>
    %577 = arith.negf %576 : vector<2x32xf32>
    %578 = math.exp %577 : vector<2x32xf32>
    %cst_225 = arith.constant 1.000000e+00 : f32
    %579 = vector.broadcast %cst_225 : f32 to vector<2x32xf32>
    %580 = arith.addf %579, %578 : vector<2x32xf32>
    %581 = arith.divf %579, %580 : vector<2x32xf32>
    %582 = vector.extract_strided_slice %565 {offsets = [0, 64], sizes = [2, 32], strides = [1, 1]} : vector<2x128xf32> to vector<2x32xf32>
    %583 = vector.extract_strided_slice %562 {offsets = [0, 64], sizes = [2, 32], strides = [1, 1]} : vector<2x128xf32> to vector<2x32xf32>
    %584 = vector.broadcast %5 : vector<1x32xf32> to vector<2x32xf32>
    %585 = arith.addf %583, %584 : vector<2x32xf32>
    %586 = arith.mulf %573, %585 : vector<2x32xf32>
    %587 = arith.addf %582, %586 : vector<2x32xf32>
    %588 = math.tanh %587 : vector<2x32xf32>
    %cst_226 = arith.constant 1.000000e+00 : f32
    %589 = vector.broadcast %cst_226 : f32 to vector<2x32xf32>
    %590 = arith.subf %589, %581 : vector<2x32xf32>
    %591 = arith.mulf %590, %588 : vector<2x32xf32>
    %592 = arith.mulf %581, %560 : vector<2x32xf32>
    %593 = arith.addf %591, %592 : vector<2x32xf32>
    %c8_i32 = arith.constant 8 : i32
    %cst_227 = arith.constant dense<0.000000e+00> : vector<2xf32>
    %594 = vector.multi_reduction <add>, %593, %cst_227 [1] : vector<2x32xf32> to vector<2xf32>
    %595 = vector.shape_cast %594 : vector<2xf32> to vector<2x1xf32>
    %cst_228 = arith.constant 3.200000e+01 : f32
    %596 = vector.broadcast %cst_228 : f32 to vector<2x1xf32>
    %597 = arith.divf %595, %596 : vector<2x1xf32>
    %598 = vector.broadcast %597 : vector<2x1xf32> to vector<2x32xf32>
    %599 = arith.subf %593, %598 : vector<2x32xf32>
    %600 = arith.mulf %599, %599 : vector<2x32xf32>
    %cst_229 = arith.constant dense<0.000000e+00> : vector<2xf32>
    %601 = vector.multi_reduction <add>, %600, %cst_229 [1] : vector<2x32xf32> to vector<2xf32>
    %602 = vector.shape_cast %601 : vector<2xf32> to vector<2x1xf32>
    %cst_230 = arith.constant 3.200000e+01 : f32
    %603 = vector.broadcast %cst_230 : f32 to vector<2x1xf32>
    %604 = arith.divf %602, %603 : vector<2x1xf32>
    %605 = vector.broadcast %597 : vector<2x1xf32> to vector<2x32xf32>
    %606 = arith.subf %593, %605 : vector<2x32xf32>
    %cst_231 = arith.constant 9.99999974E-6 : f32
    %607 = vector.broadcast %cst_231 : f32 to vector<2x1xf32>
    %608 = arith.addf %604, %607 : vector<2x1xf32>
    %609 = math.rsqrt %608 : vector<2x1xf32>
    %610 = vector.broadcast %609 : vector<2x1xf32> to vector<2x32xf32>
    %611 = arith.mulf %606, %610 : vector<2x32xf32>
    %612 = vector.broadcast %3 : vector<1x32xf32> to vector<2x32xf32>
    %613 = arith.mulf %611, %612 : vector<2x32xf32>
    %614 = vector.broadcast %4 : vector<1x32xf32> to vector<2x32xf32>
    %615 = arith.addf %613, %614 : vector<2x32xf32>
    %616 = vector.broadcast %6 : vector<1x32xf32> to vector<2x32xf32>
    %617 = arith.mulf %615, %616 : vector<2x32xf32>
    %cst_232 = arith.constant dense<0.000000e+00> : vector<2xf32>
    %618 = vector.multi_reduction <add>, %617, %cst_232 [1] : vector<2x32xf32> to vector<2xf32>
    %619 = vector.shape_cast %618 : vector<2xf32> to vector<2x1xf32>
    %620 = vector.broadcast %7 : vector<1x1xf32> to vector<2x1xf32>
    %621 = arith.addf %619, %620 : vector<2x1xf32>
    %cst_233 = arith.constant 0.000000e+00 : f32
    %622 = vector.broadcast %cst_233 : f32 to vector<2x1xf32>
    %623 = arith.cmpf oge, %621, %622 : vector<2x1xf32>
    %cst_234 = arith.constant 2.000000e-02 : f32
    %624 = vector.broadcast %cst_234 : f32 to vector<2x1xf32>
    %625 = arith.mulf %624, %621 : vector<2x1xf32>
    %626 = arith.select %623, %621, %625 : vector<2x1xi1>, vector<2x1xf32>
    %c0_235 = arith.constant 0 : index
    %c0_236 = arith.constant 0 : index
    %627 = vector.load %arg8[%c0_235, %c0_236] : memref<2x1xf32, #tpu.memory_space<vmem>>, vector<2x1xf32>
    tpu.vector_store %arg8[%c0_235, %c0_236], %626 {strides = array<i32>} : memref<2x1xf32, #tpu.memory_space<vmem>>, vector<2x1xf32>,
    return
  }
  func.func @transform_0(%arg0: i32) -> (i32, i32, i32) {
    %c0_i32 = arith.constant 0 : i32
    %c0_i32_0 = arith.constant 0 : i32
    %c0_i32_1 = arith.constant 0 : i32
    return %c0_i32, %arg0, %c0_i32_0 : i32, i32, i32
  }
  func.func @transform_1(%arg0: i32) -> (i32, i32) {
    %c0_i32 = arith.constant 0 : i32
    %c0_i32_0 = arith.constant 0 : i32
    return %arg0, %c0_i32 : i32, i32
  }
  func.func @transform_2(%arg0: i32) -> (i32, i32) {
    %c0_i32 = arith.constant 0 : i32
    %c0_i32_0 = arith.constant 0 : i32
    %c0_i32_1 = arith.constant 0 : i32
    return %c0_i32, %c0_i32_0 : i32, i32
  }
  func.func @transform_3(%arg0: i32) -> (i32, i32) {
    %c0_i32 = arith.constant 0 : i32
    %c0_i32_0 = arith.constant 0 : i32
    %c0_i32_1 = arith.constant 0 : i32
    return %c0_i32, %c0_i32_0 : i32, i32
  }
  func.func @transform_4(%arg0: i32) -> (i32, i32) {
    %c0_i32 = arith.constant 0 : i32
    %c0_i32_0 = arith.constant 0 : i32
    %c0_i32_1 = arith.constant 0 : i32
    return %c0_i32, %c0_i32_0 : i32, i32
  }
  func.func @transform_5(%arg0: i32) -> (i32, i32) {
    %c0_i32 = arith.constant 0 : i32
    %c0_i32_0 = arith.constant 0 : i32
    %c0_i32_1 = arith.constant 0 : i32
    return %c0_i32, %c0_i32_0 : i32, i32
  }
  func.func @transform_6(%arg0: i32) -> (i32, i32) {
    %c0_i32 = arith.constant 0 : i32
    %c0_i32_0 = arith.constant 0 : i32
    %c0_i32_1 = arith.constant 0 : i32
    return %c0_i32, %c0_i32_0 : i32, i32
  }
  func.func @transform_7(%arg0: i32) -> (i32, i32) {
    %c0_i32 = arith.constant 0 : i32
    %c0_i32_0 = arith.constant 0 : i32
    return %arg0, %c0_i32 : i32, i32
  }
}

</mosaic_0001>

<bundles_post_ra>
// kernel: tpu_custom_call.1
= control target key start
LH: loop header
LB: loop body
LE: loop exit
PB: predicated region body
PF: predicated region fallthrough
CT: control target
= control target key end

     0   :  { %12 = vsyncpa [#allocation4], 0  ;;  %s2059_s0 = inlined_call_operand.hbm [shape: f32[8,2,16], index: 0, kind: input, shape index: {}]   ;;  %s2060_s1 = inlined_call_operand.hbm [shape: f32[2,32], index: 1, kind: input, shape index: {}]   ;;  %s2061_s2 = inlined_call_operand.hbm [shape: f32[16,32], index: 2, kind: input, shape index: {}]   ;;  %s2062_s3 = inlined_call_operand.hbm [shape: f32[32,128], index: 3, kind: input, shape index: {}]   ;;  %s2063_s4 = inlined_call_operand.hbm [shape: f32[32,128], index: 4, kind: input, shape index: {}]   ;;  %s2064_s5 = inlined_call_operand.vmem [shape: f32[1,128], index: 5, kind: input, shape index: {}]   ;;  %s2065_s6 = inlined_call_operand.hbm [shape: f32[8,32], index: 6, kind: input, shape index: {}]   ;;  %s2066_s7 = inlined_call_operand.vmem [shape: f32[2,1], index: 7, kind: output, shape index: {}]  }
   0x1   :  { %13 = vsyncpa [#allocation6], 0 }
   0x2   :  { %14 = vsyncpa [#allocation9], 0  ;;  %s34_s26 = sshll.u32 %s2060_s1, 4  ;;  %s35_s26 = int_to_ptr.hbm [resolvable:$true] %s34_s26 }
   0x3   :  { %15 = vsyncpa [#allocation12], 0  ;;  %s1686_s27 = smov [#allocation5]   ;;  %s57_s8 = sshll.u32 %s2062_s3, 4  ;;  %s58_s8 = int_to_ptr.hbm [resolvable:$true] %s57_s8 }
   0x4   :  { %s36_s28 = sshll.u32 %s1686_s27, 4  ;;  %s1687_s9 = smov [#allocation8]   ;;  %s37_s28 = int_to_ptr.vmem [resolvable:$true] %s36_s28 }
   0x5   :  { %39 = dma.hbm_to_vmem [thread:$0]  %s35_s26, 32, %s37_s28, [#allocation6]  }
   0x6   :  { %s59_s10 = sshll.u32 %s1687_s9, 4  ;;  %s20_s13 = sshll.u32 %s2059_s0, 4  ;;  %s60_s10 = int_to_ptr.vmem [resolvable:$true] %s59_s10  ;;  %s21_s13 = int_to_ptr.hbm [resolvable:$true] %s20_s13 }
   0x7   :  { %s1688_s1 = smov 128   ;;  %s1689_s14 = smov 8  }
   0x8   :  { %65 = dma.hbm_to_vmem [thread:$0]  %s58_s8, 512, %s60_s10, [#allocation9], %s1688_s1, %s1688_s1, %s1689_s14  }
   0x9   :  { %s1690_s15 = smov [#allocation3]   ;;  %s44_s19 = sshll.u32 %s2061_s2, 4  ;;  %s45_s19 = int_to_ptr.hbm [resolvable:$true] %s44_s19 }
   0xa   :  { %s22_s16 = sshll.u32 %s1690_s15, 4  ;;  %s1691_s3 = smov 32   ;;  %s23_s16 = int_to_ptr.vmem [resolvable:$true] %s22_s16 }
   0xb   :  { %s1692_s20 = smov 2   ;;  %s1693_s21 = smov [#allocation7]  }
   0xc   :  { %28 = dma.hbm_to_vmem [thread:$0]  %s21_s13, 256, %s23_s16, [#allocation4], %s1691_s3, %s1691_s3, %s1692_s20  }
   0xd   :  { %s46_s0 = sshll.u32 %s1693_s21, 4  ;;  %s70_s24 = sshll.u32 %s2063_s4, 4  ;;  %s47_s0 = int_to_ptr.vmem [resolvable:$true] %s46_s0  ;;  %s71_s24 = int_to_ptr.hbm [resolvable:$true] %s70_s24 }
   0xe   :  { %52 = dma.hbm_to_vmem [thread:$0]  %s45_s19, 256, %s47_s0, [#allocation6], %s1688_s1, %s1688_s1, %s1689_s14  }
   0xf   :  { %s86_s27 = sshll.u32 %s2065_s6, 4  ;;  %s1694_s2 = smov [#allocation10]   ;;  %s87_s27 = int_to_ptr.hbm [resolvable:$true] %s86_s27 }
  0x10   :  { %s72_s28 = sshll.u32 %s1694_s2, 4  ;;  %s1695_s29 = smov [#allocation11]   ;;  %s73_s28 = int_to_ptr.vmem [resolvable:$true] %s72_s28 }
  0x11   :  { %78 = dma.hbm_to_vmem [thread:$0]  %s71_s24, 512, %s73_s28, [#allocation9], %s1688_s1, %s1688_s1, %s1689_s14  }
  0x12   :  { %s88_s30 = sshll.u32 %s1695_s29, 4  ;;  %s89_s30 = int_to_ptr.vmem [resolvable:$true] %s88_s30 }
  0x13   :  { %91 = dma.hbm_to_vmem [thread:$0]  %s87_s27, 128, %s89_s30, [#allocation12]  }
  0x14   :  { %1678 = dma.done.wait [#allocation4], 256  }
  0x15   :  { %1679 = vsyncadd [#allocation4], 4294967040 }
  0x16   :  { %1680 = dma.done.wait [#allocation6], 288  }
  0x17   :  { %1681 = vsyncadd [#allocation6], 4294967008 }
  0x18   :  { %1682 = dma.done.wait [#allocation9], 1024  }
  0x19   :  { %1683 = vsyncadd [#allocation9], 4294966272 }
  0x1a   :  { %1684 = dma.done.wait [#allocation12], 128  }
  0x1b   :  { %1685 = vsyncadd [#allocation12], 4294967168  ;;  %v1759_v0 = vld [vmem:[#allocation7 + $0x8] sm:$0xff]  ;;  %v1761_v1 = vld [vmem:[#allocation7] sm:$0xff]  ;;  %vm129_vm0 = vcmask 130048   ;;  %vm197_vm1 = vcmask 261120  }
  0x1c   :  { %147 = vmatpush.msra.mxu0 %v1759_v0  ;;  %v125_v2 = vld [vmem:[#allocation3] sm:$0x3]  ;;  %243 = vmatpush.msra.mxu2 %v1759_v0  ;;  %v306_v3 = vld [vmem:[#allocation3 + $0x4] sm:$0x3]  ;;  %v472_v4 = vld [vmem:[#allocation3 + $0x8] sm:$0x3] }
  0x1d   :  { %v223_v5 = vld [vmem:[#allocation3 + $0x2] sm:$0x3]  ;;  %v638_v6 = vld [vmem:[#allocation3 + $0xc] sm:$0x3]  ;;  %v1776_v7 = vld [vmem:[#allocation10 + $0x18] sm:$0xff]  ;;  %s1696_s4 = smov 64  }
  0x1e   :  { %148 = vmatpush.msra.mxu0 %v1761_v1  ;;  %244 = vmatpush.msra.mxu2 %v1761_v1  ;;  %v1780_v8 = vld [vmem:[#allocation10 + $0x10] sm:$0xff]  ;;  %v1783_v9 = vld [vmem:[#allocation10 + $0x8] sm:$0xff]  ;;  %v1786_v10 = vld [vmem:[#allocation10] sm:$0xff]  ;;  %vm153_vm2 = vcmask 254976   ;;  %v1697_v23 = vmov 32.0  }
  0x1f   :  { %1412 = vmatmul.msk.f32.vlgmr.msra.gmra.mxu0 %vm129_vm0, %v125_v2  ;;  %1414 = vmatmul.msk.f32.vlgmr.msra.gmra.mxu2 %vm129_vm0, %v223_v5  ;;  %v1458_v11 = vld [vmem:[#allocation11 + $0x5] ss:$0 sm:$0xff]  ;;  %v803_v12 = vld [vmem:[#allocation5] sm:$0x3]  ;;  %v1796_v13 = vld [vmem:[#allocation11] ss:$0 sm:$0xff]  ;;  %1466 = vrcp.f32 %v1697_v23 }
  0x20   :  { %326 = vmatpush.msrb.mxu0 %v1759_v0  ;;  %854 = vrot.lane.b32.xlu1 %v1458_v11, %s1696_s4  ;;  %v1842_v54 = vld [vmem:[#allocation8 + $0x18] sm:$0xff]  ;;  %v1844_v55 = vld [vmem:[#allocation8 + $0x10] sm:$0xff]  ;;  %v1848_v56 = vld [vmem:[#allocation8 + $0x8] sm:$0xff] }
  0x21   :  { %213 = vmatpush.msra.mxu1 %v1842_v54  ;;  %378 = vmatpush.msrb.mxu2 %v1842_v54  ;;  %v1853_v57 = vld [vmem:[#allocation8] sm:$0xff] }
  0x22   :  { %327 = vmatpush.msrb.mxu0 %v1761_v1  ;;  %295 = vmatpush.msra.mxu3 %v1842_v54  ;;  %v1880_v23 = vld [vmem:[#allocation11 + $0x2] ss:$0 sm:$0xff] }
  0x23   :  { %214 = vmatpush.msra.mxu1 %v1844_v55  ;;  %379 = vmatpush.msrb.mxu2 %v1844_v55 }
  0x24   :  { %492 = vmatpush.msra.mxu0 %v1759_v0  ;;  %296 = vmatpush.msra.mxu3 %v1844_v55 }
  0x25   :  { %v1467_v24 = vpop.eup %1466  ;;  %215 = vmatpush.msra.mxu1 %v1848_v56  ;;  %380 = vmatpush.msrb.mxu2 %v1848_v56 }
  0x26   :  { %493 = vmatpush.msra.mxu0 %v1761_v1  ;;  %v158_v26 = vmul.f32 32.0, %v1467_v24  ;;  %vm162_vm3 = vweird.f32 %v1467_v24  ;;  %297 = vmatpush.msra.mxu3 %v1848_v56 }
  0x27   :  { %1416 = vmatmul.msk.f32.vlgmr.msrb.gmra.mxu0 %vm129_vm0, %v306_v3  ;;  %216 = vmatpush.msra.mxu1 %v1853_v57 }
  0x28   :  { %658 = vmatpush.msrb.mxu0 %v1759_v0  ;;  %v159_v29 = vsub.f32 1.0, %v158_v26  ;;  %381 = vmatpush.msrb.mxu2 %v1853_v57 }
  0x29   :  { %298 = vmatpush.msra.mxu3 %v1853_v57  ;;  %409 = vmatpush.msrb.mxu1 %v1759_v0 }
  0x2a   :  { %659 = vmatpush.msrb.mxu0 %v1761_v1  ;;  %v160_v34 = vmul.f32 %v1467_v24, %v159_v29  ;;  %544 = vmatpush.msra.mxu2 %v1842_v54 }
  0x2b   :  { %461 = vmatpush.msrb.mxu3 %v1842_v54  ;;  %410 = vmatpush.msrb.mxu1 %v1761_v1 }
  0x2c   :  { %v161_v35 = vadd.f32 %v1467_v24, %v160_v34  ;;  %545 = vmatpush.msra.mxu2 %v1844_v55 }
  0x2d   :  { %462 = vmatpush.msrb.mxu3 %v1844_v55 }
  0x2e   :  { %v1816_v36 = vsel %vm162_vm3, %v1467_v24, %v161_v35  ;;  %546 = vmatpush.msra.mxu2 %v1848_v56 }
  0x2f   :  { %1420 = vmatmul.msk.f32.vlgmr.msra.gmra.mxu0 %vm129_vm0, %v472_v4  ;;  %463 = vmatpush.msrb.mxu3 %v1848_v56 }
  0x30   :  { %823 = vmatpush.msra.mxu0 %v1776_v7  ;;  %547 = vmatpush.msra.mxu2 %v1853_v57 }
  0x31   :  { %464 = vmatpush.msrb.mxu3 %v1853_v57 }
  0x32   :  { %824 = vmatpush.msra.mxu0 %v1780_v8 }
  0x34   :  { %825 = vmatpush.msra.mxu0 %v1783_v9 }
  0x36   :  { %826 = vmatpush.msra.mxu0 %v1786_v10 }
  0x37   :  { %1424 = vmatmul.msk.f32.vlgmr.msrb.gmra.mxu0 %vm129_vm0, %v638_v6 }
  0x38   :  { %1095 = vmatpush.msrb.mxu0 %v1776_v7 }
  0x3a   :  { %1096 = vmatpush.msrb.mxu0 %v1780_v8 }
  0x3c   :  { %1097 = vmatpush.msrb.mxu0 %v1783_v9 }
  0x3e   :  { %1098 = vmatpush.msrb.mxu0 %v1786_v10 }
  0x3f   :  { %1428 = vmatmul.msk.f32.vlgmr.msra.gmra.mxu0 %vm197_vm1, %v803_v12 }
  0x92   :  { %v1804_v28 = vpop.permute.xlu1 %854 }
  0x9c   :  { %v150_v14 = vpop.f32.mrf.mxu0 }
  0x9d   :  { %v151_v15 = vadd.f32 %v1796_v13, %v150_v14 }
  0x9f   :  { %v154_v16 = vsel %vm153_vm2, %v151_v15, 0.0 }
  0xa0   :  { %155 = vadd.xlane.f32.xlu0 %v154_v16 }
  0xa2   :  { %v246_v27 = vpop.f32.mrf.mxu2 }
  0xa3   :  { %v1807_v30 = vadd.f32 %v1796_v13, %v246_v27 }
  0xa4   :  { %v329_v17 = vpop.f32.mrf.mxu0 }
  0xa5   :  { %v330_v18 = vadd.f32 %v1796_v13, %v329_v17  ;;  %v249_v32 = vsel %vm153_vm2, %v1807_v30, 0.0 }
  0xa7   :  { %v332_v19 = vsel %vm153_vm2, %v330_v18, 0.0 }
  0xa8   :  { %333 = vadd.xlane.f32.xlu2 %v332_v19  ;;  %v1877_v19 = vld [vmem:[#allocation11 + $0x1] ss:$0 sm:$0xff] }
  0xac   :  { %v495_v20 = vpop.f32.mrf.mxu0 }
  0xad   :  { %v496_v21 = vadd.f32 %v1796_v13, %v495_v20 }
  0xaf   :  { %v498_v22 = vsel %vm153_vm2, %v496_v21, 0.0 }
  0xb0   :  { %499 = vadd.xlane.f32.xlu2 %v498_v22 }
  0xb4   :  { %v661_v25 = vpop.f32.mrf.mxu0 }
  0xb5   :  { %v1837_v52 = vadd.f32 %v1796_v13, %v661_v25 }
  0xb7   :  { %v664_v53 = vsel %vm153_vm2, %v1837_v52, 0.0 }
  0xb8   :  { %250 = vadd.xlane.f32.xlu2 %v249_v32 }
  0xbc   :  { %v1809_v31 = vpop.f32.mrf.mxu0 }
  0xbd   :  { %v857_v33 = vadd.f32 %v1804_v28, %v1809_v31 }
  0xbf   :  { %859 = vrot.lane.b32.xlu1 %v857_v33, %s1696_s4 }
  0xe9   :  { %665 = vadd.xlane.f32.xlu1 %v664_v53 }
 0x113   :  { %v156_v37 = vpop.xlane.xlu0 %155 }
 0x114   :  { %v164_v38 = vmul.f32 %v1816_v36, %v156_v37 }
 0x116   :  { %v1819_v39 = vsub.f32 %v151_v15, %v164_v38 }
 0x118   :  { %v166_v40 = vmul.f32 %v1819_v39, %v1819_v39 }
 0x11a   :  { %v167_v41 = vsel %vm153_vm2, %v166_v40, 0.0 }
 0x11b   :  { %168 = vadd.xlane.f32.xlu0 %v167_v41  ;;  %v334_v42 = vpop.xlane.xlu2 %333 }
 0x11c   :  { %v335_v43 = vmul.f32 %v334_v42, %v1816_v36 }
 0x11e   :  { %v1825_v44 = vsub.f32 %v330_v18, %v335_v43 }
 0x120   :  { %v337_v45 = vmul.f32 %v1825_v44, %v1825_v44 }
 0x122   :  { %v338_v46 = vsel %vm153_vm2, %v337_v45, 0.0 }
 0x123   :  { %v500_v47 = vpop.xlane.xlu2 %499  ;;  %339 = vadd.xlane.f32.xlu2 %v338_v46 }
 0x124   :  { %v501_v48 = vmul.f32 %v500_v47, %v1816_v36 }
 0x126   :  { %v1831_v49 = vsub.f32 %v496_v21, %v501_v48 }
 0x128   :  { %v503_v50 = vmul.f32 %v1831_v49, %v1831_v49 }
 0x12a   :  { %v504_v51 = vsel %vm153_vm2, %v503_v50, 0.0 }
 0x12b   :  { %505 = vadd.xlane.f32.xlu2 %v504_v51  ;;  %v1859_v58 = vpop.xlane.xlu2 %250 }
 0x143   :  { %875 = vrot.lane.b32.xlu2 %v803_v12, %s1691_s3 }
 0x18e   :  { %v169_v59 = vpop.xlane.xlu0 %168 }
 0x18f   :  { %v170_v60 = vmul.f32 %v169_v59, %v1816_v36 }
 0x191   :  { %v171_v61 = vadd.f32 1e-05, %v170_v60 }
 0x193   :  { %1468 = vrsqrt.f32 %v171_v61  ;;  %vm178_vm5 = vweird.f32 %v171_v61 }
 0x196   :  { %v340_v62 = vpop.xlane.xlu2 %339 }
 0x197   :  { %v341_v63 = vmul.f32 %v340_v62, %v1816_v36 }
 0x199   :  { %v1469_v2 = vpop.eup %1468  ;;  %v342_v3 = vadd.f32 1e-05, %v341_v63  ;;  %v1910_v63 = vld [vmem:[%s2064_s5] ss:$0 sm:$0xff]  ;;  %s1698_s5 = smov 96  }
 0x19a   :  { %v173_v4 = vmul.f32 %v1469_v2, %v171_v61  ;;  %vm179_vm4 = vweird.f32 %v1469_v2 }
 0x19b   :  { %1470 = vrsqrt.f32 %v342_v3  ;;  %vm180_vm6 = vmor %vm178_vm5, %vm179_vm4  ;;  %vm349_vm7 = vweird.f32 %v342_v3 }
 0x19c   :  { %v174_v5 = vmul.f32 %v1469_v2, %v173_v4 }
 0x19e   :  { %v175_v6 = vmul.f32 0.5, %v174_v5  ;;  %v506_v11 = vpop.xlane.xlu2 %505 }
 0x19f   :  { %v507_v12 = vmul.f32 %v506_v11, %v1816_v36 }
 0x1a0   :  { %v176_v14 = vsub.f32 1.5, %v175_v6 }
 0x1a1   :  { %v1471_v15 = vpop.eup %1470  ;;  %v508_v16 = vadd.f32 1e-05, %v507_v12 }
 0x1a2   :  { %v177_v17 = vmul.f32 %v1469_v2, %v176_v14  ;;  %v344_v18 = vmul.f32 %v1471_v15, %v342_v3  ;;  %vm350_vm8 = vweird.f32 %v1471_v15 }
 0x1a3   :  { %1472 = vrsqrt.f32 %v508_v16  ;;  %vm351_vm9 = vmor %vm349_vm7, %vm350_vm8  ;;  %vm515_vm11 = vweird.f32 %v508_v16 }
 0x1a4   :  { %v181_v20 = vsel %vm180_vm6, %v1469_v2, %v177_v17  ;;  %v345_v21 = vmul.f32 %v1471_v15, %v344_v18 }
 0x1a5   :  { %v182_v22 = vmul.f32 %v181_v20, %v1819_v39 }
 0x1a6   :  { %v346_v24 = vmul.f32 0.5, %v345_v21 }
 0x1a7   :  { %v184_v25 = vmul.f32 %v1877_v19, %v182_v22 }
 0x1a8   :  { %v347_v26 = vsub.f32 1.5, %v346_v24 }
 0x1a9   :  { %v1473_v27 = vpop.eup %1472  ;;  %v186_v29 = vadd.f32 %v1880_v23, %v184_v25 }
 0x1aa   :  { %v348_v32 = vmul.f32 %v1471_v15, %v347_v26  ;;  %v510_v33 = vmul.f32 %v1473_v27, %v508_v16  ;;  %vm516_vm12 = vweird.f32 %v1473_v27  ;;  %v860_v26 = vpop.permute.xlu1 %859 }
 0x1ab   :  { %vm187_vm10 = vcmp.ge.f32.partialorder %v186_v29, 0.0  ;;  %v188_v34 = vmul.f32 0.02, %v186_v29  ;;  %vm517_vm13 = vmor %vm515_vm11, %vm516_vm12 }
 0x1ac   :  { %v352_v35 = vsel %vm351_vm9, %v1471_v15, %v348_v32  ;;  %v511_v37 = vmul.f32 %v1473_v27, %v510_v33 }
 0x1ad   :  { %v189_v38 = vsel %vm187_vm10, %v186_v29, %v188_v34  ;;  %v353_v39 = vmul.f32 %v352_v35, %v1825_v44 }
 0x1ae   :  { %1413 = vmatmul.msk.f32.vlgmr.msra.gmra.mxu1 %vm197_vm1, %v189_v38  ;;  %v512_v40 = vmul.f32 0.5, %v511_v37 }
 0x1af   :  { %v354_v41 = vmul.f32 %v1877_v19, %v353_v39  ;;  %575 = vmatpush.msra.mxu1 %v1759_v0 }
 0x1b0   :  { %v513_v42 = vsub.f32 1.5, %v512_v40 }
 0x1b1   :  { %v355_v43 = vadd.f32 %v1880_v23, %v354_v41  ;;  %576 = vmatpush.msra.mxu1 %v1761_v1 }
 0x1b2   :  { %v514_v45 = vmul.f32 %v1473_v27, %v513_v42  ;;  %v666_v32 = vpop.xlane.xlu1 %665 }
 0x1b3   :  { %vm356_vm14 = vcmp.ge.f32.partialorder %v355_v43, 0.0  ;;  %v357_v46 = vmul.f32 0.02, %v355_v43 }
 0x1b4   :  { %v518_v47 = vsel %vm517_vm13, %v1473_v27, %v514_v45 }
 0x1b5   :  { %v519_v44 = vmul.f32 %v518_v47, %v1831_v49  ;;  %v358_v48 = vsel %vm356_vm14, %v355_v43, %v357_v46  ;;  %v252_v49 = vmul.f32 %v1859_v58, %v1816_v36 }
 0x1b6   :  { %1417 = vmatmul.msk.f32.vlgmr.msrb.gmra.mxu2 %vm197_vm1, %v358_v48 }
 0x1b7   :  { %v520_v50 = vmul.f32 %v1877_v19, %v519_v44  ;;  %710 = vmatpush.msrb.mxu2 %v1842_v54  ;;  %v253_v60 = vsub.f32 %v1807_v30, %v252_v49 }
 0x1b9   :  { %v521_v51 = vadd.f32 %v1880_v23, %v520_v50  ;;  %711 = vmatpush.msrb.mxu2 %v1844_v55  ;;  %v254_v61 = vmul.f32 %v253_v60, %v253_v60 }
 0x1bb   :  { %vm522_vm15 = vcmp.ge.f32.partialorder %v521_v51, 0.0  ;;  %v523_v53 = vmul.f32 0.02, %v521_v51  ;;  %712 = vmatpush.msrb.mxu2 %v1848_v56  ;;  %v255_v62 = vsel %vm153_vm2, %v254_v61, 0.0 }
 0x1bc   :  { %256 = vadd.xlane.f32.xlu1 %v255_v62 }
 0x1bd   :  { %v524_v59 = vsel %vm522_vm15, %v521_v51, %v523_v53  ;;  %713 = vmatpush.msrb.mxu2 %v1853_v57 }
 0x1be   :  { %1421 = vmatmul.msk.f32.vlgmr.msra.gmra.mxu2 %vm197_vm1, %v524_v59  ;;  %v667_v59 = vmul.f32 %v666_v32, %v1816_v36 }
 0x1bf   :  { %897 = vmatpush.msra.mxu2 %v1776_v7 }
 0x1c0   :  { %v668_v49 = vsub.f32 %v1837_v52, %v667_v59 }
 0x1c1   :  { %898 = vmatpush.msra.mxu2 %v1780_v8 }
 0x1c3   :  { %899 = vmatpush.msra.mxu2 %v1783_v9 }
 0x1c5   :  { %900 = vmatpush.msra.mxu2 %v1786_v10 }
 0x22b   :  { %v218_v2 = vpop.f32.mrf.mxu1 }
 0x22c   :  { %v219_v3 = vadd.f32 %v1910_v63, %v218_v2 }
 0x22e   :  { %221 = vst [vmem:[#allocation2] sm:$0x3] %v219_v3  ;;  %v876_v3 = vpop.permute.xlu2 %875 }
 0x22f   :  { %v257_v33 = vpop.xlane.xlu1 %256 }
 0x230   :  { %v258_v34 = vmul.f32 %v257_v33, %v1816_v36 }
 0x232   :  { %v259_v35 = vadd.f32 1e-05, %v258_v34 }
 0x234   :  { %vm266_vm7 = vweird.f32 %v259_v35 }
 0x235   :  { %v831_v4 = vld [vmem:[#allocation2] sm:$0x3] }
 0x236   :  { %v832_v5 = vadd.f32 %v831_v4, %v1809_v31 }
 0x238   :  { %v1429_v6 = vmul.f32 -1.442695, %v832_v5 }
 0x239   :  { %v383_v58 = vpop.f32.mrf.mxu2 }
 0x23a   :  { %1474 = vpow2.f32 %v1429_v6  ;;  %v384_v30 = vadd.f32 %v1910_v63, %v383_v58 }
 0x23c   :  { %387 = vst [vmem:[#allocation2 + $0x4] sm:$0x3] %v384_v30 }
 0x240   :  { %v1475_v11 = vpop.eup %1474 }
 0x241   :  { %v836_v12 = vadd.f32 1.0, %v1475_v11  ;;  %v549_v14 = vpop.f32.mrf.mxu2 }
 0x242   :  { %v550_v15 = vadd.f32 %v1910_v63, %v549_v14 }
 0x243   :  { %1476 = vrcp.f32 %v836_v12  ;;  %v848_v20 = vand.u32 2147483648, %v836_v12  ;;  %v846_v31 = vand.u32 2147483647, %v836_v12  ;;  %vm842_vm4 = vweird.f32 %v836_v12 }
 0x244   :  { %553 = vst [vmem:[#allocation2 + $0x8] sm:$0x3] %v550_v15  ;;  %1478 = vrsqrt.f32 %v259_v35 }
 0x245   :  { %v849_v24 = vor.u32 1.1754944e-38, %v848_v20  ;;  %vm847_vm6 = vcmp.eq.f32.partialorder %v846_v31, 8.507059e+37 }
 0x249   :  { %v1477_v16 = vpop.eup %1476 }
 0x24a   :  { %v838_v17 = vmul.f32 %v1477_v16, %v836_v12  ;;  %vm843_vm3 = vweird.f32 %v1477_v16  ;;  %v1479_v37 = vpop.eup %1478 }
 0x24b   :  { %vm844_vm5 = vmor %vm842_vm4, %vm843_vm3  ;;  %v261_v38 = vmul.f32 %v1479_v37, %v259_v35  ;;  %vm267_vm8 = vweird.f32 %v1479_v37 }
 0x24c   :  { %v839_v18 = vsub.f32 1.0, %v838_v17  ;;  %vm268_vm9 = vmor %vm266_vm7, %vm267_vm8 }
 0x24d   :  { %v262_v39 = vmul.f32 %v1479_v37, %v261_v38 }
 0x24e   :  { %v840_v21 = vmul.f32 %v1477_v16, %v839_v18 }
 0x24f   :  { %v263_v40 = vmul.f32 0.5, %v262_v39 }
 0x250   :  { %v841_v22 = vadd.f32 %v1477_v16, %v840_v21 }
 0x251   :  { %v264_v41 = vsub.f32 1.5, %v263_v40 }
 0x252   :  { %v845_v25 = vsel %vm844_vm5, %v1477_v16, %v841_v22 }
 0x253   :  { %v850_v27 = vsel %vm847_vm6, %v849_v24, %v845_v25  ;;  %v265_v42 = vmul.f32 %v1479_v37, %v264_v41  ;;  %v389_v41 = vld [vmem:[#allocation3 + $0x6] sm:$0x3] }
 0x254   :  { %v862_v29 = vmul.f32 %v860_v26, %v850_v27  ;;  %v869_v5 = vsub.f32 1.0, %v850_v27  ;;  %v878_v6 = vmul.f32 %v876_v3, %v850_v27  ;;  %1418 = vmatmul.msk.f32.vlgmr.msrb.gmra.mxu1 %vm129_vm0, %v389_v41 }
 0x255   :  { %v269_v43 = vsel %vm268_vm9, %v1479_v37, %v265_v42  ;;  %741 = vmatpush.msrb.mxu1 %v1759_v0 }
 0x256   :  { %864 = vrot.lane.b32.xlu0 %v862_v29, %s1696_s4  ;;  %v270_v45 = vmul.f32 %v269_v43, %v253_v60  ;;  %v669_v60 = vmul.f32 %v668_v49, %v668_v49 }
 0x257   :  { %742 = vmatpush.msrb.mxu1 %v1761_v1 }
 0x258   :  { %v271_v46 = vmul.f32 %v1877_v19, %v270_v45  ;;  %v670_v61 = vsel %vm153_vm2, %v669_v60, 0.0 }
 0x25a   :  { %v272_v47 = vadd.f32 %v1880_v23, %v271_v46 }
 0x25c   :  { %vm273_vm10 = vcmp.ge.f32.partialorder %v272_v47, 0.0  ;;  %v274_v44 = vmul.f32 0.02, %v272_v47 }
 0x25e   :  { %v275_v48 = vsel %vm273_vm10, %v272_v47, %v274_v44 }
 0x25f   :  { %1415 = vmatmul.msk.f32.vlgmr.msra.gmra.mxu3 %vm197_vm1, %v275_v48 }
 0x260   :  { %627 = vmatpush.msra.mxu3 %v1842_v54 }
 0x262   :  { %628 = vmatpush.msra.mxu3 %v1844_v55 }
 0x264   :  { %629 = vmatpush.msra.mxu3 %v1848_v56 }
 0x266   :  { %630 = vmatpush.msra.mxu3 %v1853_v57 }
 0x2c8   :  { %v865_v50 = vpop.permute.xlu0 %864 }
 0x2c9   :  { %v867_v51 = vadd.f32 %v865_v50, %v831_v4 }
 0x2cb   :  { %1480 = vtanh.f32 %v867_v51 }
 0x2d1   :  { %v1481_v53 = vpop.eup %1480  ;;  %v412_v60 = vpop.f32.mrf.mxu1 }
 0x2d2   :  { %871 = vrot.lane.b32.xlu0 %v1481_v53, %s1698_s5 }
 0x2e2   :  { %v300_v62 = vpop.f32.mrf.mxu3 }
 0x2e3   :  { %v301_v2 = vadd.f32 %v1910_v63, %v300_v62 }
 0x2e5   :  { %304 = vst [vmem:[#allocation2 + $0x2] sm:$0x3] %v301_v2 }
 0x2ec   :  { %v905_v35 = vld [vmem:[#allocation2 + $0x2] sm:$0x3] }
 0x2fc   :  { %671 = vadd.xlane.f32.xlu0 %v670_v61  ;;  %v413_v61 = vadd.f32 %v1796_v13, %v412_v60 }
 0x2fe   :  { %v415_v62 = vsel %vm153_vm2, %v413_v61, 0.0 }
 0x344   :  { %v872_v4 = vpop.permute.xlu0 %871 }
 0x345   :  { %v874_v58 = vmul.f32 %v872_v4, %v869_v5  ;;  %v555_v5 = vld [vmem:[#allocation3 + $0xa] sm:$0x3] }
 0x346   :  { %1422 = vmatmul.msk.f32.vlgmr.msra.gmra.mxu1 %vm129_vm0, %v555_v5 }
 0x347   :  { %v1930_v30 = vadd.f32 %v878_v6, %v874_v58  ;;  %963 = vmatpush.msra.mxu1 %v1776_v7 }
 0x349   :  { %881 = vrot.lane.b32.xlu2 %v1930_v30, %s1698_s5  ;;  %964 = vmatpush.msra.mxu1 %v1780_v8 }
 0x34b   :  { %965 = vmatpush.msra.mxu1 %v1783_v9 }
 0x34d   :  { %966 = vmatpush.msra.mxu1 %v1786_v10 }
 0x36f   :  { %v672_v11 = vpop.xlane.xlu0 %671 }
 0x370   :  { %v673_v52 = vmul.f32 %v672_v11, %v1816_v36 }
 0x372   :  { %v674_v12 = vadd.f32 1e-05, %v673_v52  ;;  %v721_v52 = vld [vmem:[#allocation3 + $0xe] sm:$0x3] }
 0x373   :  { %1426 = vmatmul.msk.f32.vlgmr.msrb.gmra.mxu1 %vm129_vm0, %v721_v52 }
 0x374   :  { %1482 = vrsqrt.f32 %v674_v12  ;;  %vm681_vm12 = vweird.f32 %v674_v12  ;;  %1227 = vmatpush.msrb.mxu1 %v1776_v7 }
 0x376   :  { %1228 = vmatpush.msrb.mxu1 %v1780_v8 }
 0x378   :  { %1229 = vmatpush.msrb.mxu1 %v1783_v9 }
 0x37a   :  { %v1483_v14 = vpop.eup %1482  ;;  %1230 = vmatpush.msrb.mxu1 %v1786_v10 }
 0x37b   :  { %v676_v15 = vmul.f32 %v1483_v14, %v674_v12  ;;  %vm682_vm11 = vweird.f32 %v1483_v14 }
 0x37c   :  { %vm683_vm13 = vmor %vm681_vm12, %vm682_vm11 }
 0x37d   :  { %v677_v16 = vmul.f32 %v1483_v14, %v676_v15 }
 0x37f   :  { %v678_v17 = vmul.f32 0.5, %v677_v16 }
 0x381   :  { %v679_v18 = vsub.f32 1.5, %v678_v17 }
 0x383   :  { %v680_v20 = vmul.f32 %v1483_v14, %v679_v18 }
 0x385   :  { %v684_v21 = vsel %vm683_vm13, %v1483_v14, %v680_v20 }
 0x386   :  { %v685_v31 = vmul.f32 %v684_v21, %v668_v49 }
 0x388   :  { %v686_v22 = vmul.f32 %v1877_v19, %v685_v31 }
 0x38a   :  { %v687_v24 = vadd.f32 %v1880_v23, %v686_v22 }
 0x38c   :  { %vm688_vm14 = vcmp.ge.f32.partialorder %v687_v24, 0.0  ;;  %v689_v25 = vmul.f32 0.02, %v687_v24 }
 0x38e   :  { %v690_v26 = vsel %vm688_vm14, %v687_v24, %v689_v25 }
 0x38f   :  { %1425 = vmatmul.msk.f32.vlgmr.msrb.gmra.mxu2 %vm197_vm1, %v690_v26 }
 0x390   :  { %1161 = vmatpush.msrb.mxu2 %v1776_v7 }
 0x392   :  { %1162 = vmatpush.msrb.mxu2 %v1780_v8 }
 0x394   :  { %1163 = vmatpush.msrb.mxu2 %v1783_v9 }
 0x396   :  { %1164 = vmatpush.msrb.mxu2 %v1786_v10 }
 0x3a3   :  { %v882_v27 = vpop.permute.xlu2 %881 }
 0x3a4   :  { %1430 = vmatmul.msk.f32.vlgmr.msra.gmra.mxu2 %vm197_vm1, %v882_v27 }
 0x412   :  { %v715_v29 = vpop.f32.mrf.mxu2 }
 0x413   :  { %v716_v32 = vadd.f32 %v1910_v63, %v715_v29 }
 0x415   :  { %719 = vst [vmem:[#allocation2 + $0xc] sm:$0x3] %v716_v32 }
 0x427   :  { %v902_v33 = vpop.f32.mrf.mxu2 }
 0x428   :  { %v926_v34 = vadd.f32 %v902_v33, %v1804_v28  ;;  %v906_v37 = vadd.f32 %v905_v35, %v902_v33 }
 0x42a   :  { %928 = vrot.lane.b32.xlu1 %v926_v34, %s1696_s4  ;;  %v1431_v38 = vmul.f32 -1.442695, %v906_v37 }
 0x42c   :  { %1484 = vpow2.f32 %v1431_v38  ;;  %v578_v38 = vpop.f32.mrf.mxu1 }
 0x432   :  { %v1485_v39 = vpop.eup %1484 }
 0x433   :  { %v910_v40 = vadd.f32 1.0, %v1485_v39 }
 0x434   :  { %v744_v39 = vpop.f32.mrf.mxu1 }
 0x435   :  { %1486 = vrcp.f32 %v910_v40  ;;  %v922_v44 = vand.u32 2147483648, %v910_v40  ;;  %vm916_vm3 = vweird.f32 %v910_v40  ;;  %v920_v48 = vand.u32 2147483647, %v910_v40 }
 0x437   :  { %v923_v51 = vor.u32 1.1754944e-38, %v922_v44  ;;  %vm921_vm5 = vcmp.eq.f32.partialorder %v920_v48, 8.507059e+37 }
 0x43b   :  { %v1487_v42 = vpop.eup %1486 }
 0x43c   :  { %v912_v43 = vmul.f32 %v1487_v42, %v910_v40  ;;  %vm917_vm15 = vweird.f32 %v1487_v42 }
 0x43d   :  { %vm918_vm4 = vmor %vm916_vm3, %vm917_vm15 }
 0x43e   :  { %v913_v45 = vsub.f32 1.0, %v912_v43  ;;  %v971_v43 = vld [vmem:[#allocation2 + $0x4] sm:$0x3] }
 0x440   :  { %v914_v46 = vmul.f32 %v1487_v42, %v913_v45 }
 0x442   :  { %v915_v47 = vadd.f32 %v1487_v42, %v914_v46 }
 0x444   :  { %v919_v50 = vsel %vm918_vm4, %v1487_v42, %v915_v47  ;;  %v579_v42 = vadd.f32 %v1796_v13, %v578_v38 }
 0x445   :  { %v924_v59 = vsel %vm921_vm5, %v923_v51, %v919_v50 }
 0x446   :  { %v938_v3 = vsub.f32 1.0, %v924_v59  ;;  %v944_v6 = vmul.f32 %v924_v59, %v1930_v30  ;;  %v581_v45 = vsel %vm153_vm2, %v579_v42, 0.0 }
 0x454   :  { %416 = vadd.xlane.f32.xlu1 %v415_v62 }
 0x49c   :  { %v929_v53 = vpop.permute.xlu1 %928 }
 0x49d   :  { %v931_v49 = vmul.f32 %v929_v53, %v924_v59 }
 0x49f   :  { %933 = vrot.lane.b32.xlu2 %v931_v49, %s1696_s4 }
 0x4c7   :  { %v417_v30 = vpop.xlane.xlu1 %416 }
 0x4c8   :  { %v418_v12 = vmul.f32 %v417_v30, %v1816_v36 }
 0x4ca   :  { %v419_v14 = vsub.f32 %v413_v61, %v418_v12 }
 0x4cc   :  { %v420_v15 = vmul.f32 %v419_v14, %v419_v14 }
 0x4ce   :  { %v421_v16 = vsel %vm153_vm2, %v420_v15, 0.0 }
 0x4cf   :  { %422 = vadd.xlane.f32.xlu1 %v421_v16 }
 0x4f9   :  { %v934_v0 = vpop.permute.xlu2 %933 }
 0x4fa   :  { %v936_v1 = vadd.f32 %v934_v0, %v905_v35 }
 0x4fc   :  { %1488 = vtanh.f32 %v936_v1 }
 0x502   :  { %v1489_v2 = vpop.eup %1488 }
 0x503   :  { %940 = vrot.lane.b32.xlu2 %v1489_v2, %s1698_s5  ;;  %v745_v2 = vadd.f32 %v1796_v13, %v744_v39 }
 0x542   :  { %v423_v18 = vpop.xlane.xlu1 %422 }
 0x543   :  { %v424_v20 = vmul.f32 %v423_v18, %v1816_v36 }
 0x545   :  { %v425_v21 = vadd.f32 1e-05, %v424_v20 }
 0x547   :  { %1490 = vrsqrt.f32 %v425_v21  ;;  %vm432_vm0 = vweird.f32 %v425_v21 }
 0x54d   :  { %v1491_v31 = vpop.eup %1490 }
 0x54e   :  { %v427_v22 = vmul.f32 %v1491_v31, %v425_v21  ;;  %vm433_vm6 = vweird.f32 %v1491_v31 }
 0x54f   :  { %vm434_vm7 = vmor %vm432_vm0, %vm433_vm6 }
 0x550   :  { %v428_v24 = vmul.f32 %v1491_v31, %v427_v22 }
 0x552   :  { %v429_v25 = vmul.f32 0.5, %v428_v24 }
 0x554   :  { %v430_v26 = vsub.f32 1.5, %v429_v25 }
 0x556   :  { %v431_v27 = vmul.f32 %v1491_v31, %v430_v26 }
 0x558   :  { %v435_v29 = vsel %vm434_vm7, %v1491_v31, %v431_v27 }
 0x559   :  { %v436_v32 = vmul.f32 %v435_v29, %v419_v14 }
 0x55b   :  { %v437_v33 = vmul.f32 %v1877_v19, %v436_v32 }
 0x55d   :  { %v941_v4 = vpop.permute.xlu2 %940  ;;  %v438_v34 = vadd.f32 %v1880_v23, %v437_v33 }
 0x55e   :  { %v943_v58 = vmul.f32 %v941_v4, %v938_v3  ;;  %v747_v3 = vsel %vm153_vm2, %v745_v2, 0.0 }
 0x55f   :  { %vm439_vm8 = vcmp.ge.f32.partialorder %v438_v34, 0.0  ;;  %v440_v35 = vmul.f32 0.02, %v438_v34 }
 0x560   :  { %v1956_v11 = vadd.f32 %v944_v6, %v943_v58 }
 0x561   :  { %v441_v37 = vsel %vm439_vm8, %v438_v34, %v440_v35 }
 0x562   :  { %947 = vrot.lane.b32.xlu0 %v1956_v11, %s1698_s5  ;;  %1419 = vmatmul.msk.f32.vlgmr.msrb.gmra.mxu3 %vm197_vm1, %v441_v37 }
 0x563   :  { %793 = vmatpush.msrb.mxu3 %v1842_v54 }
 0x565   :  { %794 = vmatpush.msrb.mxu3 %v1844_v55 }
 0x567   :  { %795 = vmatpush.msrb.mxu3 %v1848_v56 }
 0x569   :  { %796 = vmatpush.msrb.mxu3 %v1853_v57 }
 0x5d4   :  { %v948_v17 = vpop.permute.xlu0 %947 }
 0x5d5   :  { %1432 = vmatmul.msk.f32.vlgmr.msra.gmra.mxu1 %vm197_vm1, %v948_v17 }
 0x5e5   :  { %v466_v47 = vpop.f32.mrf.mxu3 }
 0x5e6   :  { %v467_v57 = vadd.f32 %v1910_v63, %v466_v47 }
 0x5e8   :  { %470 = vst [vmem:[#allocation2 + $0x6] sm:$0x3] %v467_v57 }
 0x652   :  { %v968_v40 = vpop.f32.mrf.mxu1 }
 0x653   :  { %v992_v41 = vadd.f32 %v968_v40, %v1804_v28  ;;  %v972_v46 = vadd.f32 %v971_v43, %v968_v40 }
 0x655   :  { %994 = vrot.lane.b32.xlu2 %v992_v41, %s1696_s4  ;;  %v1433_v54 = vmul.f32 -1.442695, %v972_v46 }
 0x657   :  { %1492 = vpow2.f32 %v1433_v54 }
 0x65d   :  { %v1493_v55 = vpop.eup %1492 }
 0x65e   :  { %v976_v56 = vadd.f32 1.0, %v1493_v55 }
 0x660   :  { %1494 = vrcp.f32 %v976_v56  ;;  %v988_v59 = vand.u32 2147483648, %v976_v56  ;;  %vm982_vm10 = vweird.f32 %v976_v56  ;;  %v986_v49 = vand.u32 2147483647, %v976_v56 }
 0x662   :  { %v989_v1 = vor.u32 1.1754944e-38, %v988_v59  ;;  %vm987_vm12 = vcmp.eq.f32.partialorder %v986_v49, 8.507059e+37 }
 0x666   :  { %v1495_v44 = vpop.eup %1494 }
 0x667   :  { %v978_v48 = vmul.f32 %v1495_v44, %v976_v56  ;;  %vm983_vm9 = vweird.f32 %v1495_v44 }
 0x668   :  { %vm984_vm11 = vmor %vm982_vm10, %vm983_vm9 }
 0x669   :  { %v979_v50 = vsub.f32 1.0, %v978_v48 }
 0x66b   :  { %v980_v51 = vmul.f32 %v1495_v44, %v979_v50 }
 0x66d   :  { %v981_v53 = vadd.f32 %v1495_v44, %v980_v51 }
 0x66f   :  { %v985_v0 = vsel %vm984_vm11, %v1495_v44, %v981_v53 }
 0x670   :  { %v990_v61 = vsel %vm987_vm12, %v989_v1, %v985_v0 }
 0x671   :  { %v1004_v39 = vsub.f32 1.0, %v990_v61  ;;  %v1010_v41 = vmul.f32 %v990_v61, %v1956_v11 }
 0x67e   :  { %582 = vadd.xlane.f32.xlu2 %v581_v45 }
 0x6af   :  { %v995_v60 = vpop.permute.xlu2 %994 }
 0x6b0   :  { %v997_v62 = vmul.f32 %v995_v60, %v990_v61 }
 0x6b2   :  { %999 = vrot.lane.b32.xlu0 %v997_v62, %s1696_s4 }
 0x6dc   :  { %748 = vadd.xlane.f32.xlu0 %v747_v3 }
 0x6f1   :  { %v583_v5 = vpop.xlane.xlu2 %582 }
 0x6f2   :  { %v584_v4 = vmul.f32 %v583_v5, %v1816_v36 }
 0x6f4   :  { %v585_v6 = vsub.f32 %v579_v42, %v584_v4 }
 0x6f6   :  { %v586_v58 = vmul.f32 %v585_v6, %v585_v6 }
 0x6f8   :  { %v587_v52 = vsel %vm153_vm2, %v586_v58, 0.0 }
 0x6f9   :  { %588 = vadd.xlane.f32.xlu2 %v587_v52 }
 0x724   :  { %v1000_v30 = vpop.permute.xlu0 %999 }
 0x725   :  { %v1002_v12 = vadd.f32 %v1000_v30, %v971_v43 }
 0x727   :  { %1496 = vtanh.f32 %v1002_v12 }
 0x72d   :  { %v1497_v14 = vpop.eup %1496 }
 0x72e   :  { %1006 = vrot.lane.b32.xlu1 %v1497_v14, %s1698_s5 }
 0x74f   :  { %v749_v15 = vpop.xlane.xlu0 %748 }
 0x750   :  { %v750_v13 = vmul.f32 %v749_v15, %v1816_v36 }
 0x752   :  { %v751_v16 = vsub.f32 %v745_v2, %v750_v13 }
 0x754   :  { %v752_v17 = vmul.f32 %v751_v16, %v751_v16 }
 0x756   :  { %v753_v18 = vsel %vm153_vm2, %v752_v17, 0.0 }
 0x757   :  { %754 = vadd.xlane.f32.xlu2 %v753_v18 }
 0x76c   :  { %v589_v20 = vpop.xlane.xlu2 %588 }
 0x76d   :  { %v590_v21 = vmul.f32 %v589_v20, %v1816_v36 }
 0x76f   :  { %v591_v31 = vadd.f32 1e-05, %v590_v21 }
 0x771   :  { %1498 = vrsqrt.f32 %v591_v31  ;;  %vm598_vm14 = vweird.f32 %v591_v31 }
 0x777   :  { %v1499_v22 = vpop.eup %1498 }
 0x778   :  { %v593_v24 = vmul.f32 %v1499_v22, %v591_v31  ;;  %vm599_vm13 = vweird.f32 %v1499_v22 }
 0x779   :  { %vm600_vm15 = vmor %vm598_vm14, %vm599_vm13 }
 0x77a   :  { %v594_v25 = vmul.f32 %v1499_v22, %v593_v24 }
 0x77c   :  { %v595_v26 = vmul.f32 0.5, %v594_v25 }
 0x77e   :  { %v596_v27 = vsub.f32 1.5, %v595_v26 }
 0x780   :  { %v597_v29 = vmul.f32 %v1499_v22, %v596_v27 }
 0x782   :  { %v601_v32 = vsel %vm600_vm15, %v1499_v22, %v597_v29  ;;  %v1103_v29 = vld [vmem:[#allocation2 + $0x8] sm:$0x3] }
 0x783   :  { %v602_v33 = vmul.f32 %v601_v32, %v585_v6 }
 0x785   :  { %v603_v34 = vmul.f32 %v1877_v19, %v602_v33 }
 0x787   :  { %v604_v35 = vadd.f32 %v1880_v23, %v603_v34 }
 0x789   :  { %vm605_vm3 = vcmp.ge.f32.partialorder %v604_v35, 0.0  ;;  %v606_v37 = vmul.f32 0.02, %v604_v35 }
 0x78b   :  { %v607_v38 = vsel %vm605_vm3, %v604_v35, %v606_v37 }
 0x78c   :  { %1423 = vmatmul.msk.f32.vlgmr.msra.gmra.mxu3 %vm197_vm1, %v607_v38 }
 0x78d   :  { %1029 = vmatpush.msra.mxu3 %v1776_v7 }
 0x78f   :  { %1030 = vmatpush.msra.mxu3 %v1780_v8 }
 0x791   :  { %1031 = vmatpush.msra.mxu3 %v1783_v9 }
 0x793   :  { %1032 = vmatpush.msra.mxu3 %v1786_v10 }
 0x7a0   :  { %v1007_v40 = vpop.permute.xlu1 %1006 }
 0x7a1   :  { %v1009_v42 = vmul.f32 %v1007_v40, %v1004_v39 }
 0x7a3   :  { %v2001_v43 = vadd.f32 %v1010_v41, %v1009_v42 }
 0x7a5   :  { %1013 = vrot.lane.b32.xlu2 %v2001_v43, %s1698_s5 }
 0x7ca   :  { %v755_v45 = vpop.xlane.xlu2 %754 }
 0x7cb   :  { %v756_v46 = vmul.f32 %v755_v45, %v1816_v36 }
 0x7cd   :  { %v757_v54 = vadd.f32 1e-05, %v756_v46 }
 0x7cf   :  { %1500 = vrsqrt.f32 %v757_v54  ;;  %vm764_vm5 = vweird.f32 %v757_v54 }
 0x7d5   :  { %v1501_v55 = vpop.eup %1500 }
 0x7d6   :  { %v759_v56 = vmul.f32 %v1501_v55, %v757_v54  ;;  %vm765_vm4 = vweird.f32 %v1501_v55 }
 0x7d7   :  { %vm766_vm0 = vmor %vm764_vm5, %vm765_vm4 }
 0x7d8   :  { %v760_v47 = vmul.f32 %v1501_v55, %v759_v56 }
 0x7da   :  { %v761_v57 = vmul.f32 0.5, %v760_v47 }
 0x7dc   :  { %v762_v44 = vsub.f32 1.5, %v761_v57 }
 0x7de   :  { %v763_v48 = vmul.f32 %v1501_v55, %v762_v44 }
 0x7e0   :  { %v767_v11 = vsel %vm766_vm0, %v1501_v55, %v763_v48 }
 0x7e1   :  { %v768_v50 = vmul.f32 %v767_v11, %v751_v16 }
 0x7e3   :  { %v769_v51 = vmul.f32 %v1877_v19, %v768_v50 }
 0x7e5   :  { %v770_v53 = vadd.f32 %v1880_v23, %v769_v51 }
 0x7e7   :  { %vm771_vm6 = vcmp.ge.f32.partialorder %v770_v53, 0.0  ;;  %v772_v59 = vmul.f32 0.02, %v770_v53 }
 0x7e9   :  { %v773_v49 = vsel %vm771_vm6, %v770_v53, %v772_v59 }
 0x7ea   :  { %1427 = vmatmul.msk.f32.vlgmr.msrb.gmra.mxu3 %vm197_vm1, %v773_v49 }
 0x7eb   :  { %1293 = vmatpush.msrb.mxu3 %v1776_v7 }
 0x7ed   :  { %1294 = vmatpush.msrb.mxu3 %v1780_v8  ;;  %v1037_v8 = vld [vmem:[#allocation2 + $0x6] sm:$0x3] }
 0x7ef   :  { %1295 = vmatpush.msrb.mxu3 %v1783_v9 }
 0x7f1   :  { %1296 = vmatpush.msrb.mxu3 %v1786_v10 }
 0x7ff   :  { %v1014_v0 = vpop.permute.xlu2 %1013 }
 0x800   :  { %1434 = vmatmul.msk.f32.vlgmr.msra.gmra.mxu3 %vm197_vm1, %v1014_v0 }
 0x80f   :  { %v632_v1 = vpop.f32.mrf.mxu3 }
 0x810   :  { %v633_v19 = vadd.f32 %v1910_v63, %v632_v1 }
 0x812   :  { %636 = vst [vmem:[#allocation2 + $0xa] sm:$0x3] %v633_v19 }
 0x819   :  { %v1169_v1 = vld [vmem:[#allocation2 + $0xa] sm:$0x3] }
 0x86d   :  { %v798_v23 = vpop.f32.mrf.mxu3 }
 0x86e   :  { %v799_v60 = vadd.f32 %v1910_v63, %v798_v23 }
 0x870   :  { %802 = vst [vmem:[#allocation2 + $0xe] sm:$0x3] %v799_v60 }
 0x883   :  { %v1034_v61 = vpop.f32.mrf.mxu3 }
 0x884   :  { %v1058_v7 = vadd.f32 %v1034_v61, %v1804_v28  ;;  %v1038_v9 = vadd.f32 %v1037_v8, %v1034_v61 }
 0x886   :  { %1060 = vrot.lane.b32.xlu0 %v1058_v7, %s1696_s4  ;;  %v1435_v62 = vmul.f32 -1.442695, %v1038_v9 }
 0x888   :  { %1502 = vpow2.f32 %v1435_v62 }
 0x88e   :  { %v1503_v10 = vpop.eup %1502 }
 0x88f   :  { %v1042_v2 = vadd.f32 1.0, %v1503_v10 }
 0x891   :  { %1504 = vrcp.f32 %v1042_v2  ;;  %v1054_v63 = vand.u32 2147483648, %v1042_v2  ;;  %vm1048_vm8 = vweird.f32 %v1042_v2  ;;  %v1052_v52 = vand.u32 2147483647, %v1042_v2 }
 0x893   :  { %v1055_v12 = vor.u32 1.1754944e-38, %v1054_v63  ;;  %vm1053_vm10 = vcmp.eq.f32.partialorder %v1052_v52, 8.507059e+37 }
 0x897   :  { %v1505_v3 = vpop.eup %1504 }
 0x898   :  { %v1044_v5 = vmul.f32 %v1505_v3, %v1042_v2  ;;  %vm1049_vm7 = vweird.f32 %v1505_v3 }
 0x899   :  { %vm1050_vm9 = vmor %vm1048_vm8, %vm1049_vm7 }
 0x89a   :  { %v1045_v4 = vsub.f32 1.0, %v1044_v5 }
 0x89c   :  { %v1046_v6 = vmul.f32 %v1505_v3, %v1045_v4 }
 0x89e   :  { %v1047_v58 = vadd.f32 %v1505_v3, %v1046_v6 }
 0x8a0   :  { %v1051_v30 = vsel %vm1050_vm9, %v1505_v3, %v1047_v58 }
 0x8a1   :  { %v1056_v15 = vsel %vm1053_vm10, %v1055_v12, %v1051_v30 }
 0x8a2   :  { %v1070_v20 = vsub.f32 1.0, %v1056_v15  ;;  %v1076_v31 = vmul.f32 %v1056_v15, %v2001_v43 }
 0x8f8   :  { %v1061_v14 = vpop.permute.xlu0 %1060 }
 0x8f9   :  { %v1063_v13 = vmul.f32 %v1061_v14, %v1056_v15 }
 0x8fb   :  { %1065 = vrot.lane.b32.xlu1 %v1063_v13, %s1696_s4 }
 0x96d   :  { %v1066_v16 = vpop.permute.xlu1 %1065 }
 0x96e   :  { %v1068_v17 = vadd.f32 %v1066_v16, %v1037_v8 }
 0x970   :  { %1506 = vtanh.f32 %v1068_v17 }
 0x976   :  { %v1507_v18 = vpop.eup %1506 }
 0x977   :  { %1072 = vrot.lane.b32.xlu1 %v1507_v18, %s1698_s5 }
 0x9e9   :  { %v1073_v21 = vpop.permute.xlu1 %1072 }
 0x9ea   :  { %v1075_v22 = vmul.f32 %v1073_v21, %v1070_v20 }
 0x9ec   :  { %v1077_v24 = vadd.f32 %v1076_v31, %v1075_v22  ;;  %v1235_v31 = vld [vmem:[#allocation2 + $0xc] sm:$0x3] }
 0x9ee   :  { %1079 = vrot.lane.b32.xlu0 %v1077_v24, %s1698_s5 }
 0xa60   :  { %v1080_v25 = vpop.permute.xlu0 %1079 }
 0xa61   :  { %1436 = vmatmul.msk.f32.vlgmr.msrb.gmra.mxu0 %vm197_vm1, %v1080_v25 }
 0xade   :  { %v1100_v26 = vpop.f32.mrf.mxu0 }
 0xadf   :  { %v1124_v27 = vadd.f32 %v1100_v26, %v1804_v28  ;;  %v1104_v32 = vadd.f32 %v1103_v29, %v1100_v26 }
 0xae1   :  { %1126 = vrot.lane.b32.xlu2 %v1124_v27, %s1696_s4  ;;  %v1437_v33 = vmul.f32 -1.442695, %v1104_v32 }
 0xae3   :  { %1508 = vpow2.f32 %v1437_v33 }
 0xae9   :  { %v1509_v34 = vpop.eup %1508 }
 0xaea   :  { %v1108_v35 = vadd.f32 1.0, %v1509_v34 }
 0xaec   :  { %1510 = vrcp.f32 %v1108_v35  ;;  %v1120_v42 = vand.u32 2147483648, %v1108_v35  ;;  %vm1114_vm12 = vweird.f32 %v1108_v35  ;;  %v1118_v43 = vand.u32 2147483647, %v1108_v35 }
 0xaee   :  { %v1121_v46 = vor.u32 1.1754944e-38, %v1120_v42  ;;  %vm1119_vm14 = vcmp.eq.f32.partialorder %v1118_v43, 8.507059e+37 }
 0xaf2   :  { %v1511_v37 = vpop.eup %1510 }
 0xaf3   :  { %v1110_v38 = vmul.f32 %v1511_v37, %v1108_v35  ;;  %vm1115_vm11 = vweird.f32 %v1511_v37 }
 0xaf4   :  { %vm1116_vm13 = vmor %vm1114_vm12, %vm1115_vm11 }
 0xaf5   :  { %v1111_v39 = vsub.f32 1.0, %v1110_v38 }
 0xaf7   :  { %v1112_v40 = vmul.f32 %v1511_v37, %v1111_v39 }
 0xaf9   :  { %v1113_v41 = vadd.f32 %v1511_v37, %v1112_v40 }
 0xafb   :  { %v1117_v45 = vsel %vm1116_vm13, %v1511_v37, %v1113_v41 }
 0xafc   :  { %v1122_v55 = vsel %vm1119_vm14, %v1121_v46, %v1117_v45 }
 0xafd   :  { %v1136_v48 = vsub.f32 1.0, %v1122_v55  ;;  %v1142_v50 = vmul.f32 %v1122_v55, %v1077_v24 }
 0xb3b   :  { %v1127_v54 = vpop.permute.xlu2 %1126 }
 0xb3c   :  { %v1129_v56 = vmul.f32 %v1127_v54, %v1122_v55 }
 0xb3e   :  { %1131 = vrot.lane.b32.xlu1 %v1129_v56, %s1696_s4 }
 0xbb0   :  { %v1132_v47 = vpop.permute.xlu1 %1131 }
 0xbb1   :  { %v1134_v57 = vadd.f32 %v1132_v47, %v1103_v29 }
 0xbb3   :  { %1512 = vtanh.f32 %v1134_v57 }
 0xbb9   :  { %v1513_v44 = vpop.eup %1512 }
 0xbba   :  { %1138 = vrot.lane.b32.xlu0 %v1513_v44, %s1698_s5 }
 0xc2c   :  { %v1139_v11 = vpop.permute.xlu0 %1138 }
 0xc2d   :  { %v1141_v51 = vmul.f32 %v1139_v11, %v1136_v48 }
 0xc2f   :  { %v1143_v53 = vadd.f32 %v1142_v50, %v1141_v51  ;;  %v1301_v50 = vld [vmem:[#allocation2 + $0xe] sm:$0x3] }
 0xc31   :  { %1145 = vrot.lane.b32.xlu2 %v1143_v53, %s1698_s5 }
 0xc8b   :  { %v1146_v59 = vpop.permute.xlu2 %1145 }
 0xc8c   :  { %1438 = vmatmul.msk.f32.vlgmr.msrb.gmra.mxu2 %vm197_vm1, %v1146_v59 }
 0xd0f   :  { %v1166_v49 = vpop.f32.mrf.mxu2 }
 0xd10   :  { %v1190_v0 = vadd.f32 %v1166_v49, %v1804_v28  ;;  %v1170_v19 = vadd.f32 %v1169_v1, %v1166_v49 }
 0xd12   :  { %1192 = vrot.lane.b32.xlu1 %v1190_v0, %s1696_s4  ;;  %v1439_v23 = vmul.f32 -1.442695, %v1170_v19 }
 0xd14   :  { %1514 = vpow2.f32 %v1439_v23 }
 0xd1a   :  { %v1515_v60 = vpop.eup %1514 }
 0xd1b   :  { %v1174_v61 = vadd.f32 1.0, %v1515_v60 }
 0xd1d   :  { %1516 = vrcp.f32 %v1174_v61  ;;  %v1186_v2 = vand.u32 2147483648, %v1174_v61  ;;  %vm1180_vm3 = vweird.f32 %v1174_v61  ;;  %v1184_v3 = vand.u32 2147483647, %v1174_v61 }
 0xd1f   :  { %v1187_v4 = vor.u32 1.1754944e-38, %v1186_v2  ;;  %vm1185_vm5 = vcmp.eq.f32.partialorder %v1184_v3, 8.507059e+37 }
 0xd23   :  { %v1517_v7 = vpop.eup %1516 }
 0xd24   :  { %v1176_v8 = vmul.f32 %v1517_v7, %v1174_v61  ;;  %vm1181_vm15 = vweird.f32 %v1517_v7 }
 0xd25   :  { %vm1182_vm4 = vmor %vm1180_vm3, %vm1181_vm15  ;;  %vm1402_vm15 = vcmask 1024  }
 0xd26   :  { %v1177_v9 = vsub.f32 1.0, %v1176_v8 }
 0xd28   :  { %v1178_v62 = vmul.f32 %v1517_v7, %v1177_v9 }
 0xd2a   :  { %v1179_v10 = vadd.f32 %v1517_v7, %v1178_v62 }
 0xd2c   :  { %v1183_v5 = vsel %vm1182_vm4, %v1517_v7, %v1179_v10 }
 0xd2d   :  { %v1188_v58 = vsel %vm1185_vm5, %v1187_v4, %v1183_v5 }
 0xd2e   :  { %v1202_v14 = vsub.f32 1.0, %v1188_v58  ;;  %v1208_v13 = vmul.f32 %v1188_v58, %v1143_v53 }
 0xd84   :  { %v1193_v6 = vpop.permute.xlu1 %1192 }
 0xd85   :  { %v1195_v63 = vmul.f32 %v1193_v6, %v1188_v58 }
 0xd87   :  { %1197 = vrot.lane.b32.xlu0 %v1195_v63, %s1696_s4 }
 0xdf9   :  { %v1198_v52 = vpop.permute.xlu0 %1197 }
 0xdfa   :  { %v1200_v30 = vadd.f32 %v1198_v52, %v1169_v1 }
 0xdfc   :  { %1518 = vtanh.f32 %v1200_v30 }
 0xe02   :  { %v1519_v12 = vpop.eup %1518 }
 0xe03   :  { %1204 = vrot.lane.b32.xlu2 %v1519_v12, %s1698_s5 }
 0xe5d   :  { %v1205_v15 = vpop.permute.xlu2 %1204 }
 0xe5e   :  { %v1207_v16 = vmul.f32 %v1205_v15, %v1202_v14 }
 0xe60   :  { %v1209_v17 = vadd.f32 %v1208_v13, %v1207_v16 }
 0xe62   :  { %1211 = vrot.lane.b32.xlu1 %v1209_v17, %s1698_s5 }
 0xed4   :  { %v1212_v18 = vpop.permute.xlu1 %1211 }
 0xed5   :  { %1440 = vmatmul.msk.f32.vlgmr.msrb.gmra.mxu1 %vm197_vm1, %v1212_v18  ;;  %v1463_v18 = vld [vmem:[#allocation11 + $0x4] ss:$0 sm:$0xff] }
 0xf52   :  { %v1232_v20 = vpop.f32.mrf.mxu1 }
 0xf53   :  { %v1256_v21 = vadd.f32 %v1232_v20, %v1804_v28  ;;  %v1236_v22 = vadd.f32 %v1235_v31, %v1232_v20  ;;  %v1464_v20 = vld [vmem:[#allocation11 + $0x6] ss:$0 sm:$0xff] }
 0xf55   :  { %1258 = vrot.lane.b32.xlu0 %v1256_v21, %s1696_s4  ;;  %v1441_v24 = vmul.f32 -1.442695, %v1236_v22 }
 0xf57   :  { %1520 = vpow2.f32 %v1441_v24 }
 0xf5d   :  { %v1521_v25 = vpop.eup %1520 }
 0xf5e   :  { %v1240_v26 = vadd.f32 1.0, %v1521_v25 }
 0xf60   :  { %1522 = vrcp.f32 %v1240_v26  ;;  %v1252_v35 = vand.u32 2147483648, %v1240_v26  ;;  %vm1246_vm6 = vweird.f32 %v1240_v26  ;;  %v1250_v37 = vand.u32 2147483647, %v1240_v26 }
 0xf62   :  { %v1253_v39 = vor.u32 1.1754944e-38, %v1252_v35  ;;  %vm1251_vm8 = vcmp.eq.f32.partialorder %v1250_v37, 8.507059e+37 }
 0xf66   :  { %v1523_v27 = vpop.eup %1522 }
 0xf67   :  { %v1242_v29 = vmul.f32 %v1523_v27, %v1240_v26  ;;  %vm1247_vm0 = vweird.f32 %v1523_v27 }
 0xf68   :  { %vm1248_vm7 = vmor %vm1246_vm6, %vm1247_vm0 }
 0xf69   :  { %v1243_v32 = vsub.f32 1.0, %v1242_v29 }
 0xf6b   :  { %v1244_v33 = vmul.f32 %v1523_v27, %v1243_v32 }
 0xf6d   :  { %v1245_v34 = vadd.f32 %v1523_v27, %v1244_v33 }
 0xf6f   :  { %v1249_v38 = vsel %vm1248_vm7, %v1523_v27, %v1245_v34 }
 0xf70   :  { %v1254_v41 = vsel %vm1251_vm8, %v1253_v39, %v1249_v38 }
 0xf71   :  { %v1268_v54 = vsub.f32 1.0, %v1254_v41  ;;  %v1274_v56 = vmul.f32 %v1254_v41, %v1209_v17  ;;  %v1462_v17 = vld [vmem:[#allocation11 + $0x3] ss:$0 sm:$0xff] }
 0xfc7   :  { %v1259_v40 = vpop.permute.xlu0 %1258 }
 0xfc8   :  { %v1261_v42 = vmul.f32 %v1259_v40, %v1254_v41 }
 0xfca   :  { %1263 = vrot.lane.b32.xlu2 %v1261_v42, %s1696_s4 }
0x1024   :  { %v1264_v43 = vpop.permute.xlu2 %1263 }
0x1025   :  { %v1266_v45 = vadd.f32 %v1264_v43, %v1235_v31 }
0x1027   :  { %1524 = vtanh.f32 %v1266_v45 }
0x102d   :  { %v1525_v46 = vpop.eup %1524 }
0x102e   :  { %1270 = vrot.lane.b32.xlu1 %v1525_v46, %s1698_s5  ;;  %v1465_v46 = vld [vmem:[#allocation11 + $0x7] ss:$0 sm:$0xff] }
0x10a0   :  { %v1271_v55 = vpop.permute.xlu1 %1270 }
0x10a1   :  { %v1273_v47 = vmul.f32 %v1271_v55, %v1268_v54 }
0x10a3   :  { %v1275_v57 = vadd.f32 %v1274_v56, %v1273_v47 }
0x10a5   :  { %1277 = vrot.lane.b32.xlu0 %v1275_v57, %s1698_s5 }
0x1117   :  { %v1278_v44 = vpop.permute.xlu0 %1277 }
0x1118   :  { %1442 = vmatmul.msk.f32.vlgmr.msrb.gmra.mxu3 %vm197_vm1, %v1278_v44 }
0x119b   :  { %v1298_v48 = vpop.f32.mrf.mxu3 }
0x119c   :  { %v1322_v11 = vadd.f32 %v1298_v48, %v1804_v28  ;;  %v1302_v51 = vadd.f32 %v1301_v50, %v1298_v48 }
0x119e   :  { %1324 = vrot.lane.b32.xlu2 %v1322_v11, %s1696_s4  ;;  %v1443_v53 = vmul.f32 -1.442695, %v1302_v51 }
0x11a0   :  { %1526 = vpow2.f32 %v1443_v53 }
0x11a6   :  { %v1527_v59 = vpop.eup %1526 }
0x11a7   :  { %v1306_v49 = vadd.f32 1.0, %v1527_v59 }
0x11a9   :  { %1528 = vrcp.f32 %v1306_v49  ;;  %v1318_v61 = vand.u32 2147483648, %v1306_v49  ;;  %vm1312_vm1 = vweird.f32 %v1306_v49  ;;  %v1316_v7 = vand.u32 2147483647, %v1306_v49 }
0x11ab   :  { %v1319_v8 = vor.u32 1.1754944e-38, %v1318_v61  ;;  %vm1317_vm11 = vcmp.eq.f32.partialorder %v1316_v7, 8.507059e+37 }
0x11af   :  { %v1529_v0 = vpop.eup %1528 }
0x11b0   :  { %v1308_v1 = vmul.f32 %v1529_v0, %v1306_v49  ;;  %vm1313_vm9 = vweird.f32 %v1529_v0 }
0x11b1   :  { %vm1314_vm10 = vmor %vm1312_vm1, %vm1313_vm9 }
0x11b2   :  { %v1309_v19 = vsub.f32 1.0, %v1308_v1 }
0x11b4   :  { %v1310_v23 = vmul.f32 %v1529_v0, %v1309_v19 }
0x11b6   :  { %v1311_v60 = vadd.f32 %v1529_v0, %v1310_v23 }
0x11b8   :  { %v1315_v28 = vsel %vm1314_vm10, %v1529_v0, %v1311_v60 }
0x11b9   :  { %v1320_v62 = vsel %vm1317_vm11, %v1319_v8, %v1315_v28 }
0x11ba   :  { %v1334_v4 = vsub.f32 1.0, %v1320_v62  ;;  %v1340_v58 = vmul.f32 %v1320_v62, %v1275_v57 }
0x11f8   :  { %v1325_v9 = vpop.permute.xlu2 %1324 }
0x11f9   :  { %v1327_v10 = vmul.f32 %v1325_v9, %v1320_v62 }
0x11fb   :  { %1329 = vrot.lane.b32.xlu1 %v1327_v10, %s1696_s4 }
0x126d   :  { %v1330_v2 = vpop.permute.xlu1 %1329 }
0x126e   :  { %v1332_v3 = vadd.f32 %v1330_v2, %v1301_v50 }
0x1270   :  { %1530 = vtanh.f32 %v1332_v3 }
0x1276   :  { %v1531_v5 = vpop.eup %1530 }
0x1277   :  { %1336 = vrot.lane.b32.xlu0 %v1531_v5, %s1698_s5 }
0x12e9   :  { %v1337_v6 = vpop.permute.xlu0 %1336 }
0x12ea   :  { %v1339_v63 = vmul.f32 %v1337_v6, %v1334_v4 }
0x12ec   :  { %v1341_v52 = vadd.f32 %v1340_v58, %v1339_v63 }
0x12ee   :  { %1343 = vrot.lane.b32.xlu2 %v1341_v52, %s1698_s5 }
0x1348   :  { %v1344_v30 = vpop.permute.xlu2 %1343 }
0x1349   :  { %v1346_v12 = vsel %vm153_vm2, %v1344_v30, 0.0 }
0x134a   :  { %1347 = vadd.xlane.f32.xlu1 %v1346_v12 }
0x13bd   :  { %v1348_v14 = vpop.xlane.xlu1 %1347 }
0x13be   :  { %v1349_v15 = vmul.f32 %v1348_v14, %v1816_v36 }
0x13c0   :  { %v1350_v13 = vsub.f32 %v1341_v52, %v1349_v15 }
0x13c2   :  { %v1351_v16 = vmul.f32 %v1350_v13, %v1350_v13 }
0x13c4   :  { %1353 = vrot.lane.b32.xlu0 %v1351_v16, %s1698_s5 }
0x13cc   :  { %1374 = vrot.lane.b32.xlu0 %v1462_v17, %s1691_s3 }
0x13d4   :  { %1380 = vrot.lane.b32.xlu0 %v1463_v18, %s1691_s3 }
0x13dc   :  { %1386 = vrot.lane.b32.xlu0 %v1464_v20, %s1691_s3 }
0x1436   :  { %v1354_v21 = vpop.permute.xlu0 %1353 }
0x1437   :  { %v1356_v31 = vsel %vm153_vm2, %v1354_v21, 0.0 }
0x1438   :  { %1357 = vadd.xlane.f32.xlu2 %v1356_v31 }
0x143e   :  { %v1375_v26 = vpop.permute.xlu0 %1374 }
0x1446   :  { %v1381_v34 = vpop.permute.xlu0 %1380 }
0x144e   :  { %v1387_v41 = vpop.permute.xlu0 %1386 }
0x14ab   :  { %v1358_v22 = vpop.xlane.xlu2 %1357 }
0x14ac   :  { %v1359_v24 = vmul.f32 %v1358_v22, %v1816_v36 }
0x14ae   :  { %v1360_v25 = vadd.f32 1e-05, %v1359_v24 }
0x14b0   :  { %1532 = vrsqrt.f32 %v1360_v25  ;;  %vm1367_vm13 = vweird.f32 %v1360_v25 }
0x14b6   :  { %v1533_v27 = vpop.eup %1532 }
0x14b7   :  { %v1362_v29 = vmul.f32 %v1533_v27, %v1360_v25  ;;  %vm1368_vm12 = vweird.f32 %v1533_v27 }
0x14b8   :  { %vm1369_vm14 = vmor %vm1367_vm13, %vm1368_vm12 }
0x14b9   :  { %v1363_v32 = vmul.f32 %v1533_v27, %v1362_v29 }
0x14bb   :  { %v1364_v33 = vmul.f32 0.5, %v1363_v32 }
0x14bd   :  { %v1365_v35 = vsub.f32 1.5, %v1364_v33 }
0x14bf   :  { %v1366_v37 = vmul.f32 %v1533_v27, %v1365_v35 }
0x14c1   :  { %v1370_v38 = vsel %vm1369_vm14, %v1533_v27, %v1366_v37 }
0x14c2   :  { %v1371_v39 = vmul.f32 %v1370_v38, %v1350_v13 }
0x14c4   :  { %v1377_v40 = vmul.f32 %v1375_v26, %v1371_v39 }
0x14c6   :  { %v1383_v42 = vadd.f32 %v1381_v34, %v1377_v40 }
0x14c8   :  { %v1389_v43 = vmul.f32 %v1387_v41, %v1383_v42 }
0x14ca   :  { %1391 = vrot.lane.b32.xlu0 %v1389_v43, %s1698_s5 }
0x153c   :  { %v1392_v36 = vpop.permute.xlu0 %1391 }
0x153d   :  { %v1394_v45 = vsel %vm153_vm2, %v1392_v36, 0.0 }
0x153e   :  { %1395 = vadd.xlane.f32.xlu0 %v1394_v45 }
0x15b1   :  { %v1396_v54 = vpop.xlane.xlu0 %1395 }
0x15b2   :  { %v1398_v55 = vadd.f32 %v1465_v46, %v1396_v54 }
0x15b4   :  { %vm1399_vm3 = vcmp.ge.f32.partialorder %v1398_v55, 0.0  ;;  %v1400_v56 = vmul.f32 0.02, %v1398_v55 }
0x15b6   :  { %v1401_v47 = vsel %vm1399_vm3, %v1398_v55, %v1400_v56 }
0x15b7   :  { %1403 = vst.msk [vmem:[%s2066_s7] sm:$0x3] %vm1402_vm15, %v1401_v47 }
0x15b8   :  { %1408 = vsyncpa [#allocation4], 1 }
0x15b9   :  { %1409 = vsyncpa [#allocation6], 1 }
0x15ba   :  { %1410 = vsyncpa [#allocation9], 1 }
0x15bb   :  { %1411 = vsyncpa [#allocation12], 1 }

</bundles_post_ra>
